<compile_context>
chip_gen: v7x
topology: tpu7x:2x2x1
jax: 0.10.0
libtpu: 0.0.40
codegen_flags: <defaults>
</compile_context>

<pallas_src>
import functools

import numpy as np
import jax
import jax.numpy as jnp
from jax.experimental import pallas as pl
from jax.experimental.pallas import tpu as pltpu


# ----------------------------------------------------------------------------
# helpers
# ----------------------------------------------------------------------------
def _full_spec(shape):
    """BlockSpec covering the whole array (grid of size 1)."""
    n = len(shape)
    return pl.BlockSpec(shape, lambda *_, _n=n: (0,) * _n)


def _tap_masks(B, H, W, KH, KW, pad):
    """(KH*KW, B*H*W) 0/1 masks: tap (i,j) valid at output pixel (h,w)."""
    m = np.arange(B * H * W)
    hh = (m // W) % H
    ww = m % W
    rows = []
    for i in range(KH):
        for j in range(KW):
            di, dj = i - pad, j - pad
            ok = (hh + di >= 0) & (hh + di < H) & (ww + dj >= 0) & (ww + dj < W)
            rows.append(ok)
    return np.stack(rows, axis=0).astype(np.float32)


def _pool_select(B, H, W, k):
    """(B*H*W, B*(H//k)*(W//k)) 0/1 stride-k decimation matrix (MXU gather)."""
    Ho, Wo = H // k, W // k
    M, Mo = B * H * W, B * Ho * Wo
    mo = np.arange(Mo)
    b = mo // (Ho * Wo)
    r = mo % (Ho * Wo)
    ho = r // Wo
    wo = r % Wo
    src = b * H * W + (ho * k) * W + (wo * k)
    sel = np.zeros((M, Mo), np.float32)
    sel[src, mo] = 1.0
    return sel


# ----------------------------------------------------------------------------
# fused forward kernel: walks the (traced-in) op plan over VMEM-resident data
# ----------------------------------------------------------------------------
def _fused_kernel(*refs, op_plan, n_in, n_out):
    in_refs = refs[:n_in]
    out_refs = refs[n_in:n_in + n_out]

    ri = 1                       # next parameter / aux operand ref
    x = in_refs[0][...]          # activation: (C, B*H*W) f32 in the conv trunk
    wrote_head = False

    for name, p in op_plan:
        if name == 'conv':
            # One im2col matmul: patches (KH*KW*Cin, M) built from lane-shifted
            # masked copies of the flat activation; weight pre-flattened to
            # (Cout, KH*KW*Cin) on the wrapper side.
            wf = in_refs[ri][...]          # (Cout, KH*KW*Cin)
            bias = in_refs[ri + 1][...]    # (Cout, 1)
            masks = in_refs[ri + 2][...]   # (KH*KW, M)
            ri += 3
            KH, KW, pad, W, G = p['KH'], p['KW'], p['pad'], p['W'], p['G']
            Cin, M = x.shape
            if G > 0:
                zpad = jnp.zeros((Cin, G), jnp.float32)
                xm = jnp.concatenate([zpad, x, zpad], axis=1)   # aligned margins
            else:
                xm = x
            parts = []
            t = 0
            for i in range(KH):
                for j in range(KW):
                    d = (i - pad) * W + (j - pad)
                    sl = xm[:, G + d:G + d + M]            # pure lane shift
                    parts.append(sl * masks[t:t + 1, :])   # zero the pad ring
                    t += 1
            patches = jnp.concatenate(parts, axis=0)       # (KH*KW*Cin, M)
            x = jnp.dot(wf, patches,
                        preferred_element_type=jnp.float32) + bias

        elif name == 'bn':
            # training-mode batch norm, one pass: var = E[x^2] - mean^2
            g = in_refs[ri][...]           # (C, 1)
            beta = in_refs[ri + 1][...]    # (C, 1)
            ri += 2
            M = x.shape[1]
            inv_n = 1.0 / M
            s1 = jnp.sum(x, axis=1, keepdims=True)
            s2 = jnp.sum(x * x, axis=1, keepdims=True)
            mean = s1 * inv_n
            var = s2 * inv_n - mean * mean
            scale = g * jax.lax.rsqrt(var + p['eps'])
            x = x * scale + (beta - mean * scale)

        elif name == 'relu':
            x = jnp.maximum(x, 0.0)
        elif name == 'leakyrelu':
            x = jnp.where(x > 0.0, x, p['slope'] * x)
        elif name == 'tanh':
            x = jnp.tanh(x)
        elif name == 'sigmoid':
            x = jax.nn.sigmoid(x)

        elif name == 'max_pool2d':
            # k x k (k == stride, pad 0) pooling: lane-rotate maxes over the
            # window, then one constant 0/1 matmul does the stride-k lane
            # decimation on the MXU (no minor-dim reshapes / relayouts).
            sel = in_refs[ri][...]         # (M, M // k^2)
            ri += 1
            k, W = p['k'], p['W']
            a = x
            for s in range(1, k):          # max over the window along w
                a = jnp.maximum(
                    a, jnp.concatenate([x[:, s:], x[:, :s]], axis=1))
            b_ = a
            for s in range(1, k):          # max over the window along h
                b_ = jnp.maximum(
                    b_, jnp.concatenate([a[:, s * W:], a[:, :s * W]], axis=1))
            x = jnp.dot(b_, sel, preferred_element_type=jnp.float32)

        elif name == 'flatten':
            # (C, B*Hf*Wf) -> (B, C*Hf*Wf) in PyTorch NCHW-flatten order,
            # built once from row slices + lane concatenation (tiny data).
            B_, HW = p['B'], p['HW']
            C = x.shape[0]
            rows = []
            for b in range(B_):
                xb = x[:, b * HW:(b + 1) * HW]                    # (C, HW)
                rows.append(jnp.concatenate(
                    [xb[c:c + 1, :] for c in range(C)], axis=1))  # (1, C*HW)
            x = jnp.concatenate(rows, axis=0) if B_ > 1 else rows[0]

        elif name == 'cs_mul':
            x = x * in_refs[ri][...]       # full-lane VPU multiply on (B, F)
            ri += 1

        elif name == 'linear':
            wt = in_refs[ri][...]          # (F, O), pre-transposed
            bl = in_refs[ri + 1][...]      # (1, O)
            ri += 2
            x = jnp.dot(x, wt, preferred_element_type=jnp.float32) + bl

        elif name == 'sample_loss':
            # softmax probs + weighted NLL (unnormalized, like the reference):
            #   loss = - sum_i w[train_idx[i]] * log_softmax(x)[i, target[i]]
            onehot = in_refs[ri][...]      # (B, nway)
            wsel = in_refs[ri + 1][...]    # (B, 1)
            ri += 2
            m = jnp.max(x, axis=1, keepdims=True)
            e = jnp.exp(x - m)
            s = jnp.sum(e, axis=1, keepdims=True)
            prob = e / s
            logp = (x - m) - jnp.log(s)
            picked = jnp.sum(logp * onehot, axis=1, keepdims=True)   # (B, 1)
            loss = -jnp.sum(wsel * picked, axis=0, keepdims=True)    # (1, 1)
            out_refs[0][...] = prob
            out_refs[1][...] = loss
            wrote_head = True

    if not wrote_head:
        out_refs[0][...] = x.astype(out_refs[0].dtype)


# ----------------------------------------------------------------------------
# wrapper: static config walk -> operand prep (under jit) -> one pallas_call
# ----------------------------------------------------------------------------
def _fused_forward(config, x_nchw, target, train_idx, vars_list, cs_list,
                   use_cs, use_sw, eps=1e-5):
    B, C0, H0, W0 = x_nchw.shape
    # NCHW -> (C, B*H*W): channels in sublanes, flattened spatial in lanes.
    x0 = jnp.transpose(x_nchw, (1, 0, 2, 3)).reshape(C0, B * H0 * W0)
    x0 = x0.astype(jnp.float32)

    operands = [x0]
    op_plan = []
    C, H, W = C0, H0, W0        # logical (channels, spatial) while 4-D
    feat = None                 # feature width once flattened to (B, feat)
    idx = 0
    cs_idx = 0
    head_nway = None

    for name, param in config:
        if name == 'conv2d':
            w, b = vars_list[idx], vars_list[idx + 1]
            idx += 2
            Cout, Cin, KH, KW, stride, pad = param[:6]
            assert feat is None and Cin == C
            assert stride == 1 and 2 * pad == KH - 1 and 2 * pad == KW - 1, \
                "TODO(synk): only stride-1 'same' convolutions are implemented"
            M = B * H * W
            need = pad * W + pad
            G = 0 if need == 0 else int(-(-need // 128) * 128)  # aligned margin
            wf = jnp.transpose(w, (0, 2, 3, 1)).reshape(Cout, KH * KW * Cin)
            operands += [wf.astype(jnp.float32),
                         b.reshape(Cout, 1).astype(jnp.float32),
                         jnp.asarray(_tap_masks(B, H, W, KH, KW, pad))]
            op_plan.append(('conv', dict(KH=KH, KW=KW, pad=pad, W=W, G=G)))
            C = Cout

        elif name == 'bn':
            # TODO(synk): running-stat updates / inference-mode BN not wired;
            # only the bn_training=True (batch statistics) path is implemented.
            g, bb = vars_list[idx], vars_list[idx + 1]
            idx += 2
            assert feat is None, "TODO(synk): bn on 2-D activations not implemented"
            operands += [g.reshape(C, 1).astype(jnp.float32),
                         bb.reshape(C, 1).astype(jnp.float32)]
            op_plan.append(('bn', dict(eps=eps)))

        elif name == 'relu':
            op_plan.append(('relu', {}))
        elif name == 'leakyrelu':
            op_plan.append(('leakyrelu', dict(slope=float(param[0]))))
        elif name == 'tanh':
            op_plan.append(('tanh', {}))
        elif name == 'sigmoid':
            op_plan.append(('sigmoid', {}))

        elif name == 'max_pool2d':
            k, s, pp = param[0], param[1], param[2]
            assert k == s and pp == 0 and feat is None, \
                "TODO(synk): only k==stride, pad=0 pooling is implemented"
            assert H % k == 0 and W % k == 0
            operands.append(jnp.asarray(_pool_select(B, H, W, k)))
            op_plan.append(('max_pool2d', dict(k=k, W=W)))
            H //= k
            W //= k

        elif name == 'flatten':
            if feat is None:
                op_plan.append(('flatten', dict(B=B, HW=H * W)))
                feat = C * H * W

        elif name == 'linear':
            w, b = vars_list[idx], vars_list[idx + 1]
            idx += 2
            O = w.shape[0]
            assert feat is not None, \
                "TODO(synk): linear before flatten not implemented"
            operands += [jnp.transpose(w).astype(jnp.float32),
                         b.reshape(1, O).astype(jnp.float32)]
            op_plan.append(('linear', {}))
            feat = O

        elif name == 'cs_weight':
            if use_cs:
                assert feat is not None, \
                    "TODO(synk): cs_weight before flatten not implemented"
                sel = jnp.take(cs_list[cs_idx], target, axis=0)
                operands.append(sel.astype(jnp.float32))
                op_plan.append(('cs_mul', {}))
            cs_idx += 1

        elif name == 'sample_weight':
            if use_sw:
                nway = feat
                wsel = jnp.take(cs_list[cs_idx], train_idx, axis=-1)
                wsel = wsel.reshape(B, 1).astype(jnp.float32)
                onehot = jax.nn.one_hot(target, nway, dtype=jnp.float32)
                operands += [onehot, wsel]
                op_plan.append(('sample_loss', {}))
                head_nway = nway
            cs_idx += 1

        else:
            # TODO(synk): convt2d / upsample / avg_pool2d / reshape not needed
            # by this config and not implemented in the fused kernel.
            raise NotImplementedError(name)

    assert idx == len(vars_list)

    if head_nway is not None:
        out_shape = (jax.ShapeDtypeStruct((B, head_nway), jnp.float32),
                     jax.ShapeDtypeStruct((1, 1), jnp.float32))
        out_specs = (_full_spec((B, head_nway)), _full_spec((1, 1)))
        n_out = 2
    else:
        assert feat is not None, \
            "TODO(synk): only flattened (2-D) final activations are supported"
        out_shape = jax.ShapeDtypeStruct((B, feat), jnp.float32)
        out_specs = _full_spec((B, feat))
        n_out = 1

    kernel = functools.partial(_fused_kernel, op_plan=tuple(op_plan),
                               n_in=len(operands), n_out=n_out)

    # Single fused kernel, grid=(1,): all activations stay in VMEM (live set
    # well under 1 MiB incl. layout padding).
    return pl.pallas_call(
        kernel,
        out_shape=out_shape,
        grid=(1,),
        in_specs=[_full_spec(tuple(o.shape)) for o in operands],
        out_specs=out_specs,
        compiler_params=pltpu.CompilerParams(
            dimension_semantics=("arbitrary",),
            vmem_limit_bytes=8 * 1024 * 1024),
    )(*operands)


# ----------------------------------------------------------------------------
# MetaLearner: config-driven module mirroring the PyTorch reference
# ----------------------------------------------------------------------------
class MetaLearnerPallas:
    def __init__(self, config, key):
        self.config = config
        self.vars = []
        self.vars_bn = []
        self.vars_cs = []
        self._jit_cache = {}
        for name, param in config:
            if name == 'conv2d':
                key, sub = jax.random.split(key)
                cout, cin, kh, kw = param[:4]
                fan_in = cin * kh * kw
                w = jax.random.normal(sub, (cout, cin, kh, kw),
                                      jnp.float32) * jnp.sqrt(2.0 / fan_in)
                self.vars += [w, jnp.zeros((cout,), jnp.float32)]
            elif name == 'linear':
                key, sub = jax.random.split(key)
                out_f, in_f = param
                w = jax.random.normal(sub, (out_f, in_f),
                                      jnp.float32) * jnp.sqrt(2.0 / in_f)
                self.vars += [w, jnp.zeros((out_f,), jnp.float32)]
            elif name == 'bn':
                c = param[0]
                self.vars += [jnp.ones((c,), jnp.float32),
                              jnp.zeros((c,), jnp.float32)]
                self.vars_bn += [jnp.zeros((c,), jnp.float32),
                                 jnp.ones((c,), jnp.float32)]
            elif name == 'cs_weight':
                key, sub = jax.random.split(key)
                self.vars_cs.append(jax.random.uniform(sub, tuple(param),
                                                       jnp.float32, 0.5, 1.5))
            elif name == 'sample_weight':
                # (reference inits to zeros; non-trivial init for a useful demo)
                key, sub = jax.random.split(key)
                w = jax.random.uniform(sub, (param[0],), jnp.float32)
                self.vars_cs.append(w / jnp.sum(w))
            elif name in ['tanh', 'relu', 'upsample', 'avg_pool2d',
                          'max_pool2d', 'flatten', 'reshape', 'leakyrelu',
                          'sigmoid']:
                continue
            else:
                raise NotImplementedError(name)

    def parameters(self):
        return self.vars

    def cs_parameters(self):
        return self.vars_cs

    def _get_fused(self, use_cs, use_sw):
        k = (use_cs, use_sw)
        if k not in self._jit_cache:
            cfg = self.config

            def fwd(x, target, train_idx, vars_list, cs_list):
                return _fused_forward(cfg, x, target, train_idx,
                                      vars_list, cs_list, use_cs, use_sw)

            self._jit_cache[k] = jax.jit(fwd)
        return self._jit_cache[k]

    def forward(self, x, target, train_idx=None, vars=None,
                bn_training=True, cs_weight=True):
        # x arrives NCHW (PyTorch convention); the fused kernel runs in a
        # channel-in-sublane / spatial-in-lane layout.
        if vars is None:
            vars = self.vars
        if not bn_training:
            # TODO(synk): inference-mode BN (running stats) not implemented.
            raise NotImplementedError("bn_training=False path not implemented")
        has_cs = any(n == 'cs_weight' for n, _ in self.config)
        has_sw = any(n == 'sample_weight' for n, _ in self.config)
        use_cs = bool(cs_weight and has_cs)
        use_sw = bool(has_sw and train_idx is not None)
        fn = self._get_fused(use_cs, use_sw)
        ti = train_idx if train_idx is not None else jnp.zeros(
            (x.shape[0],), jnp.int32)
        out = fn(x, target, ti, list(vars), list(self.vars_cs))
        if use_sw:
            prob, loss = out
            return prob, loss[0, 0]
        return out


# ----------------------------------------------------------------------------
# main
# ----------------------------------------------------------------------------
if __name__ == "__main__":
    B, C, H, W = 2, 4, 16, 16
    n_way = 4
    n_train = 8
    feat = 8 * 4 * 4        # 8 channels, 4x4 spatial after two 2x2 max pools

    config = [
        ('conv2d',        [8, 4, 3, 3, 1, 1]),
        ('bn',            [8]),
        ('relu',          [True]),
        ('max_pool2d',    [2, 2, 0]),
        ('conv2d',        [8, 8, 3, 3, 1, 1]),
        ('bn',            [8]),
        ('relu',          [True]),
        ('max_pool2d',    [2, 2, 0]),
        ('flatten',       []),
        ('cs_weight',     [n_way, feat]),
        ('linear',        [n_way, feat]),
        ('sample_weight', [n_train]),
    ]

    key = jax.random.PRNGKey(0)
    k1, k2, k3, k4 = jax.random.split(key, 4)
    x = jax.random.normal(k1, (B, C, H, W), jnp.float32)
    target = jax.random.randint(k2, (B,), 0, n_way)
    train_idx = jax.random.randint(k3, (B,), 0, n_train)

    net = MetaLearnerPallas(config, k4)
    prob, loss = net.forward(x, target, train_idx=train_idx)
    jax.block_until_ready(prob)
    jax.block_until_ready(loss)
    assert prob.shape == (B, n_way)
    assert loss.shape == ()
    assert bool(jnp.all(jnp.isfinite(prob))) and bool(jnp.isfinite(loss))
    assert bool(jnp.allclose(jnp.sum(prob, axis=1), 1.0, atol=1e-5))
    print("KERNEL_OK")
</pallas_src>

<mosaic_0001>
module attributes {stable_mosaic.version = 11 : i64} {
  func.func @_fused_kernel(%arg0: i32, %arg1: memref<4x512xf32, #tpu.memory_space<vmem>>, %arg2: memref<8x36xf32, #tpu.memory_space<vmem>>, %arg3: memref<8x1xf32, #tpu.memory_space<vmem>>, %arg4: memref<9x512xf32, #tpu.memory_space<vmem>>, %arg5: memref<8x1xf32, #tpu.memory_space<vmem>>, %arg6: memref<8x1xf32, #tpu.memory_space<vmem>>, %arg7: memref<512x128xf32, #tpu.memory_space<vmem>>, %arg8: memref<8x72xf32, #tpu.memory_space<vmem>>, %arg9: memref<8x1xf32, #tpu.memory_space<vmem>>, %arg10: memref<9x128xf32, #tpu.memory_space<vmem>>, %arg11: memref<8x1xf32, #tpu.memory_space<vmem>>, %arg12: memref<8x1xf32, #tpu.memory_space<vmem>>, %arg13: memref<128x32xf32, #tpu.memory_space<vmem>>, %arg14: memref<2x128xf32, #tpu.memory_space<vmem>>, %arg15: memref<128x4xf32, #tpu.memory_space<vmem>>, %arg16: memref<1x4xf32, #tpu.memory_space<vmem>>, %arg17: memref<2x4xf32, #tpu.memory_space<vmem>>, %arg18: memref<2x1xf32, #tpu.memory_space<vmem>>, %arg19: memref<2x4xf32, #tpu.memory_space<vmem>>, %arg20: memref<1x1xf32, #tpu.memory_space<vmem>>) attributes {dimension_semantics = [#tpu.dimension_semantics<arbitrary>], iteration_bounds = array<i64: 1>, scalar_prefetch = 0 : i64, scratch_operands = 0 : i64, tpu.core_type = #tpu.core_type<tc>, window_params = [{pipeline_mode = #tpu.pipeline_mode<synchronous>, transform_indices = @transform_0, window_bounds = array<i64: 4, 512>}, {pipeline_mode = #tpu.pipeline_mode<synchronous>, transform_indices = @transform_1, window_bounds = array<i64: 8, 36>}, {pipeline_mode = #tpu.pipeline_mode<synchronous>, transform_indices = @transform_2, window_bounds = array<i64: 8, 1>}, {pipeline_mode = #tpu.pipeline_mode<synchronous>, transform_indices = @transform_3, window_bounds = array<i64: 9, 512>}, {pipeline_mode = #tpu.pipeline_mode<synchronous>, transform_indices = @transform_4, window_bounds = array<i64: 8, 1>}, {pipeline_mode = #tpu.pipeline_mode<synchronous>, transform_indices = @transform_5, window_bounds = array<i64: 8, 1>}, {pipeline_mode = #tpu.pipeline_mode<synchronous>, transform_indices = @transform_6, window_bounds = array<i64: 512, 128>}, {pipeline_mode = #tpu.pipeline_mode<synchronous>, transform_indices = @transform_7, window_bounds = array<i64: 8, 72>}, {pipeline_mode = #tpu.pipeline_mode<synchronous>, transform_indices = @transform_8, window_bounds = array<i64: 8, 1>}, {pipeline_mode = #tpu.pipeline_mode<synchronous>, transform_indices = @transform_9, window_bounds = array<i64: 9, 128>}, {pipeline_mode = #tpu.pipeline_mode<synchronous>, transform_indices = @transform_10, window_bounds = array<i64: 8, 1>}, {pipeline_mode = #tpu.pipeline_mode<synchronous>, transform_indices = @transform_11, window_bounds = array<i64: 8, 1>}, {pipeline_mode = #tpu.pipeline_mode<synchronous>, transform_indices = @transform_12, window_bounds = array<i64: 128, 32>}, {pipeline_mode = #tpu.pipeline_mode<synchronous>, transform_indices = @transform_13, window_bounds = array<i64: 2, 128>}, {pipeline_mode = #tpu.pipeline_mode<synchronous>, transform_indices = @transform_14, window_bounds = array<i64: 128, 4>}, {pipeline_mode = #tpu.pipeline_mode<synchronous>, transform_indices = @transform_15, window_bounds = array<i64: 1, 4>}, {pipeline_mode = #tpu.pipeline_mode<synchronous>, transform_indices = @transform_16, window_bounds = array<i64: 2, 4>}, {pipeline_mode = #tpu.pipeline_mode<synchronous>, transform_indices = @transform_17, window_bounds = array<i64: 2, 1>}, {pipeline_mode = #tpu.pipeline_mode<synchronous>, transform_indices = @transform_18, window_bounds = array<i64: 2, 4>}, {pipeline_mode = #tpu.pipeline_mode<synchronous>, transform_indices = @transform_19, window_bounds = array<i64: 1, 1>}]} {
    %c0 = arith.constant 0 : index
    %c0_0 = arith.constant 0 : index
    %0 = vector.load %arg1[%c0, %c0_0] : memref<4x512xf32, #tpu.memory_space<vmem>>, vector<4x512xf32>
    %c0_1 = arith.constant 0 : index
    %c0_2 = arith.constant 0 : index
    %1 = vector.load %arg2[%c0_1, %c0_2] : memref<8x36xf32, #tpu.memory_space<vmem>>, vector<8x36xf32>
    %c0_3 = arith.constant 0 : index
    %c0_4 = arith.constant 0 : index
    %2 = vector.load %arg3[%c0_3, %c0_4] : memref<8x1xf32, #tpu.memory_space<vmem>>, vector<8x1xf32>
    %c0_5 = arith.constant 0 : index
    %c0_6 = arith.constant 0 : index
    %3 = vector.load %arg4[%c0_5, %c0_6] : memref<9x512xf32, #tpu.memory_space<vmem>>, vector<9x512xf32>
    %cst = arith.constant 0.000000e+00 : f32
    %4 = vector.broadcast %cst : f32 to vector<4x128xf32>
    %5 = tpu.concatenate %4, %0, %4 in 1 : vector<4x128xf32>, vector<4x512xf32>, vector<4x128xf32> -> vector<4x768xf32>
    %6 = vector.extract_strided_slice %5 {offsets = [0, 111], sizes = [4, 512], strides = [1, 1]} : vector<4x768xf32> to vector<4x512xf32>
    %7 = vector.extract_strided_slice %3 {offsets = [0, 0], sizes = [1, 512], strides = [1, 1]} : vector<9x512xf32> to vector<1x512xf32>
    %8 = vector.broadcast %7 : vector<1x512xf32> to vector<4x512xf32>
    %9 = arith.mulf %6, %8 : vector<4x512xf32>
    %10 = vector.extract_strided_slice %5 {offsets = [0, 112], sizes = [4, 512], strides = [1, 1]} : vector<4x768xf32> to vector<4x512xf32>
    %11 = vector.extract_strided_slice %3 {offsets = [1, 0], sizes = [1, 512], strides = [1, 1]} : vector<9x512xf32> to vector<1x512xf32>
    %12 = vector.broadcast %11 : vector<1x512xf32> to vector<4x512xf32>
    %13 = arith.mulf %10, %12 : vector<4x512xf32>
    %14 = vector.extract_strided_slice %5 {offsets = [0, 113], sizes = [4, 512], strides = [1, 1]} : vector<4x768xf32> to vector<4x512xf32>
    %15 = vector.extract_strided_slice %3 {offsets = [2, 0], sizes = [1, 512], strides = [1, 1]} : vector<9x512xf32> to vector<1x512xf32>
    %16 = vector.broadcast %15 : vector<1x512xf32> to vector<4x512xf32>
    %17 = arith.mulf %14, %16 : vector<4x512xf32>
    %18 = vector.extract_strided_slice %5 {offsets = [0, 127], sizes = [4, 512], strides = [1, 1]} : vector<4x768xf32> to vector<4x512xf32>
    %19 = vector.extract_strided_slice %3 {offsets = [3, 0], sizes = [1, 512], strides = [1, 1]} : vector<9x512xf32> to vector<1x512xf32>
    %20 = vector.broadcast %19 : vector<1x512xf32> to vector<4x512xf32>
    %21 = arith.mulf %18, %20 : vector<4x512xf32>
    %22 = vector.extract_strided_slice %5 {offsets = [0, 128], sizes = [4, 512], strides = [1, 1]} : vector<4x768xf32> to vector<4x512xf32>
    %23 = vector.extract_strided_slice %3 {offsets = [4, 0], sizes = [1, 512], strides = [1, 1]} : vector<9x512xf32> to vector<1x512xf32>
    %24 = vector.broadcast %23 : vector<1x512xf32> to vector<4x512xf32>
    %25 = arith.mulf %22, %24 : vector<4x512xf32>
    %26 = vector.extract_strided_slice %5 {offsets = [0, 129], sizes = [4, 512], strides = [1, 1]} : vector<4x768xf32> to vector<4x512xf32>
    %27 = vector.extract_strided_slice %3 {offsets = [5, 0], sizes = [1, 512], strides = [1, 1]} : vector<9x512xf32> to vector<1x512xf32>
    %28 = vector.broadcast %27 : vector<1x512xf32> to vector<4x512xf32>
    %29 = arith.mulf %26, %28 : vector<4x512xf32>
    %30 = vector.extract_strided_slice %5 {offsets = [0, 143], sizes = [4, 512], strides = [1, 1]} : vector<4x768xf32> to vector<4x512xf32>
    %31 = vector.extract_strided_slice %3 {offsets = [6, 0], sizes = [1, 512], strides = [1, 1]} : vector<9x512xf32> to vector<1x512xf32>
    %32 = vector.broadcast %31 : vector<1x512xf32> to vector<4x512xf32>
    %33 = arith.mulf %30, %32 : vector<4x512xf32>
    %34 = vector.extract_strided_slice %5 {offsets = [0, 144], sizes = [4, 512], strides = [1, 1]} : vector<4x768xf32> to vector<4x512xf32>
    %35 = vector.extract_strided_slice %3 {offsets = [7, 0], sizes = [1, 512], strides = [1, 1]} : vector<9x512xf32> to vector<1x512xf32>
    %36 = vector.broadcast %35 : vector<1x512xf32> to vector<4x512xf32>
    %37 = arith.mulf %34, %36 : vector<4x512xf32>
    %38 = vector.extract_strided_slice %5 {offsets = [0, 145], sizes = [4, 512], strides = [1, 1]} : vector<4x768xf32> to vector<4x512xf32>
    %39 = vector.extract_strided_slice %3 {offsets = [8, 0], sizes = [1, 512], strides = [1, 1]} : vector<9x512xf32> to vector<1x512xf32>
    %40 = vector.broadcast %39 : vector<1x512xf32> to vector<4x512xf32>
    %41 = arith.mulf %38, %40 : vector<4x512xf32>
    %42 = tpu.concatenate %9, %13, %17, %21, %25, %29, %33, %37, %41 in 0 : vector<4x512xf32>, vector<4x512xf32>, vector<4x512xf32>, vector<4x512xf32>, vector<4x512xf32>, vector<4x512xf32>, vector<4x512xf32>, vector<4x512xf32>, vector<4x512xf32> -> vector<36x512xf32>
    %cst_7 = arith.constant dense<0.000000e+00> : vector<8x512xf32>
    %43 = tpu.matmul %1, %42, %cst_7 {dimension_numbers = #tpu.dot_dimension_numbers<[1], [0], [0], [1], [0, 0, 1, 1], [], []>} : vector<8x36xf32>, vector<36x512xf32>, vector<8x512xf32> -> vector<8x512xf32>
    %44 = vector.broadcast %2 : vector<8x1xf32> to vector<8x512xf32>
    %45 = arith.addf %43, %44 : vector<8x512xf32>
    %c0_8 = arith.constant 0 : index
    %c0_9 = arith.constant 0 : index
    %46 = vector.load %arg5[%c0_8, %c0_9] : memref<8x1xf32, #tpu.memory_space<vmem>>, vector<8x1xf32>
    %c0_10 = arith.constant 0 : index
    %c0_11 = arith.constant 0 : index
    %47 = vector.load %arg6[%c0_10, %c0_11] : memref<8x1xf32, #tpu.memory_space<vmem>>, vector<8x1xf32>
    %cst_12 = arith.constant dense<0.000000e+00> : vector<8xf32>
    %48 = vector.multi_reduction <add>, %45, %cst_12 [1] : vector<8x512xf32> to vector<8xf32>
    %49 = vector.shape_cast %48 : vector<8xf32> to vector<8x1xf32>
    %50 = arith.mulf %45, %45 : vector<8x512xf32>
    %cst_13 = arith.constant dense<0.000000e+00> : vector<8xf32>
    %51 = vector.multi_reduction <add>, %50, %cst_13 [1] : vector<8x512xf32> to vector<8xf32>
    %52 = vector.shape_cast %51 : vector<8xf32> to vector<8x1xf32>
    %cst_14 = arith.constant 0.001953125 : f32
    %53 = vector.broadcast %cst_14 : f32 to vector<8x1xf32>
    %54 = arith.mulf %49, %53 : vector<8x1xf32>
    %cst_15 = arith.constant 0.001953125 : f32
    %55 = vector.broadcast %cst_15 : f32 to vector<8x1xf32>
    %56 = arith.mulf %52, %55 : vector<8x1xf32>
    %57 = arith.mulf %54, %54 : vector<8x1xf32>
    %58 = arith.subf %56, %57 : vector<8x1xf32>
    %cst_16 = arith.constant 9.99999974E-6 : f32
    %59 = vector.broadcast %cst_16 : f32 to vector<8x1xf32>
    %60 = arith.addf %58, %59 : vector<8x1xf32>
    %61 = math.rsqrt %60 : vector<8x1xf32>
    %62 = arith.mulf %46, %61 : vector<8x1xf32>
    %63 = vector.broadcast %62 : vector<8x1xf32> to vector<8x512xf32>
    %64 = arith.mulf %45, %63 : vector<8x512xf32>
    %65 = arith.mulf %54, %62 : vector<8x1xf32>
    %66 = arith.subf %47, %65 : vector<8x1xf32>
    %67 = vector.broadcast %66 : vector<8x1xf32> to vector<8x512xf32>
    %68 = arith.addf %64, %67 : vector<8x512xf32>
    %cst_17 = arith.constant 0.000000e+00 : f32
    %69 = vector.broadcast %cst_17 : f32 to vector<8x512xf32>
    %70 = arith.maximumf %68, %69 : vector<8x512xf32>
    %c0_18 = arith.constant 0 : index
    %c0_19 = arith.constant 0 : index
    %71 = vector.load %arg7[%c0_18, %c0_19] : memref<512x128xf32, #tpu.memory_space<vmem>>, vector<512x128xf32>
    %72 = vector.extract_strided_slice %70 {offsets = [0, 1], sizes = [8, 511], strides = [1, 1]} : vector<8x512xf32> to vector<8x511xf32>
    %73 = vector.extract_strided_slice %70 {offsets = [0, 0], sizes = [8, 1], strides = [1, 1]} : vector<8x512xf32> to vector<8x1xf32>
    %74 = tpu.concatenate %72, %73 in 1 : vector<8x511xf32>, vector<8x1xf32> -> vector<8x512xf32>
    %75 = arith.maximumf %70, %74 : vector<8x512xf32>
    %76 = vector.extract_strided_slice %75 {offsets = [0, 16], sizes = [8, 496], strides = [1, 1]} : vector<8x512xf32> to vector<8x496xf32>
    %77 = vector.extract_strided_slice %75 {offsets = [0, 0], sizes = [8, 16], strides = [1, 1]} : vector<8x512xf32> to vector<8x16xf32>
    %78 = tpu.concatenate %76, %77 in 1 : vector<8x496xf32>, vector<8x16xf32> -> vector<8x512xf32>
    %79 = arith.maximumf %75, %78 : vector<8x512xf32>
    %cst_20 = arith.constant dense<0.000000e+00> : vector<8x128xf32>
    %80 = tpu.matmul %79, %71, %cst_20 {dimension_numbers = #tpu.dot_dimension_numbers<[1], [0], [0], [1], [0, 0, 1, 1], [], []>} : vector<8x512xf32>, vector<512x128xf32>, vector<8x128xf32> -> vector<8x128xf32>
    %c0_21 = arith.constant 0 : index
    %c0_22 = arith.constant 0 : index
    %81 = vector.load %arg8[%c0_21, %c0_22] : memref<8x72xf32, #tpu.memory_space<vmem>>, vector<8x72xf32>
    %c0_23 = arith.constant 0 : index
    %c0_24 = arith.constant 0 : index
    %82 = vector.load %arg9[%c0_23, %c0_24] : memref<8x1xf32, #tpu.memory_space<vmem>>, vector<8x1xf32>
    %c0_25 = arith.constant 0 : index
    %c0_26 = arith.constant 0 : index
    %83 = vector.load %arg10[%c0_25, %c0_26] : memref<9x128xf32, #tpu.memory_space<vmem>>, vector<9x128xf32>
    %cst_27 = arith.constant 0.000000e+00 : f32
    %84 = vector.broadcast %cst_27 : f32 to vector<8x128xf32>
    %85 = tpu.concatenate %84, %80, %84 in 1 : vector<8x128xf32>, vector<8x128xf32>, vector<8x128xf32> -> vector<8x384xf32>
    %86 = vector.extract_strided_slice %85 {offsets = [0, 119], sizes = [8, 128], strides = [1, 1]} : vector<8x384xf32> to vector<8x128xf32>
    %87 = vector.extract_strided_slice %83 {offsets = [0, 0], sizes = [1, 128], strides = [1, 1]} : vector<9x128xf32> to vector<1x128xf32>
    %88 = vector.broadcast %87 : vector<1x128xf32> to vector<8x128xf32>
    %89 = arith.mulf %86, %88 : vector<8x128xf32>
    %90 = vector.extract_strided_slice %85 {offsets = [0, 120], sizes = [8, 128], strides = [1, 1]} : vector<8x384xf32> to vector<8x128xf32>
    %91 = vector.extract_strided_slice %83 {offsets = [1, 0], sizes = [1, 128], strides = [1, 1]} : vector<9x128xf32> to vector<1x128xf32>
    %92 = vector.broadcast %91 : vector<1x128xf32> to vector<8x128xf32>
    %93 = arith.mulf %90, %92 : vector<8x128xf32>
    %94 = vector.extract_strided_slice %85 {offsets = [0, 121], sizes = [8, 128], strides = [1, 1]} : vector<8x384xf32> to vector<8x128xf32>
    %95 = vector.extract_strided_slice %83 {offsets = [2, 0], sizes = [1, 128], strides = [1, 1]} : vector<9x128xf32> to vector<1x128xf32>
    %96 = vector.broadcast %95 : vector<1x128xf32> to vector<8x128xf32>
    %97 = arith.mulf %94, %96 : vector<8x128xf32>
    %98 = vector.extract_strided_slice %85 {offsets = [0, 127], sizes = [8, 128], strides = [1, 1]} : vector<8x384xf32> to vector<8x128xf32>
    %99 = vector.extract_strided_slice %83 {offsets = [3, 0], sizes = [1, 128], strides = [1, 1]} : vector<9x128xf32> to vector<1x128xf32>
    %100 = vector.broadcast %99 : vector<1x128xf32> to vector<8x128xf32>
    %101 = arith.mulf %98, %100 : vector<8x128xf32>
    %102 = vector.extract_strided_slice %85 {offsets = [0, 128], sizes = [8, 128], strides = [1, 1]} : vector<8x384xf32> to vector<8x128xf32>
    %103 = vector.extract_strided_slice %83 {offsets = [4, 0], sizes = [1, 128], strides = [1, 1]} : vector<9x128xf32> to vector<1x128xf32>
    %104 = vector.broadcast %103 : vector<1x128xf32> to vector<8x128xf32>
    %105 = arith.mulf %102, %104 : vector<8x128xf32>
    %106 = vector.extract_strided_slice %85 {offsets = [0, 129], sizes = [8, 128], strides = [1, 1]} : vector<8x384xf32> to vector<8x128xf32>
    %107 = vector.extract_strided_slice %83 {offsets = [5, 0], sizes = [1, 128], strides = [1, 1]} : vector<9x128xf32> to vector<1x128xf32>
    %108 = vector.broadcast %107 : vector<1x128xf32> to vector<8x128xf32>
    %109 = arith.mulf %106, %108 : vector<8x128xf32>
    %110 = vector.extract_strided_slice %85 {offsets = [0, 135], sizes = [8, 128], strides = [1, 1]} : vector<8x384xf32> to vector<8x128xf32>
    %111 = vector.extract_strided_slice %83 {offsets = [6, 0], sizes = [1, 128], strides = [1, 1]} : vector<9x128xf32> to vector<1x128xf32>
    %112 = vector.broadcast %111 : vector<1x128xf32> to vector<8x128xf32>
    %113 = arith.mulf %110, %112 : vector<8x128xf32>
    %114 = vector.extract_strided_slice %85 {offsets = [0, 136], sizes = [8, 128], strides = [1, 1]} : vector<8x384xf32> to vector<8x128xf32>
    %115 = vector.extract_strided_slice %83 {offsets = [7, 0], sizes = [1, 128], strides = [1, 1]} : vector<9x128xf32> to vector<1x128xf32>
    %116 = vector.broadcast %115 : vector<1x128xf32> to vector<8x128xf32>
    %117 = arith.mulf %114, %116 : vector<8x128xf32>
    %118 = vector.extract_strided_slice %85 {offsets = [0, 137], sizes = [8, 128], strides = [1, 1]} : vector<8x384xf32> to vector<8x128xf32>
    %119 = vector.extract_strided_slice %83 {offsets = [8, 0], sizes = [1, 128], strides = [1, 1]} : vector<9x128xf32> to vector<1x128xf32>
    %120 = vector.broadcast %119 : vector<1x128xf32> to vector<8x128xf32>
    %121 = arith.mulf %118, %120 : vector<8x128xf32>
    %122 = tpu.concatenate %89, %93, %97, %101, %105, %109, %113, %117, %121 in 0 : vector<8x128xf32>, vector<8x128xf32>, vector<8x128xf32>, vector<8x128xf32>, vector<8x128xf32>, vector<8x128xf32>, vector<8x128xf32>, vector<8x128xf32>, vector<8x128xf32> -> vector<72x128xf32>
    %cst_28 = arith.constant dense<0.000000e+00> : vector<8x128xf32>
    %123 = tpu.matmul %81, %122, %cst_28 {dimension_numbers = #tpu.dot_dimension_numbers<[1], [0], [0], [1], [0, 0, 1, 1], [], []>} : vector<8x72xf32>, vector<72x128xf32>, vector<8x128xf32> -> vector<8x128xf32>
    %124 = vector.broadcast %82 : vector<8x1xf32> to vector<8x128xf32>
    %125 = arith.addf %123, %124 : vector<8x128xf32>
    %c0_29 = arith.constant 0 : index
    %c0_30 = arith.constant 0 : index
    %126 = vector.load %arg11[%c0_29, %c0_30] : memref<8x1xf32, #tpu.memory_space<vmem>>, vector<8x1xf32>
    %c0_31 = arith.constant 0 : index
    %c0_32 = arith.constant 0 : index
    %127 = vector.load %arg12[%c0_31, %c0_32] : memref<8x1xf32, #tpu.memory_space<vmem>>, vector<8x1xf32>
    %cst_33 = arith.constant dense<0.000000e+00> : vector<8xf32>
    %128 = vector.multi_reduction <add>, %125, %cst_33 [1] : vector<8x128xf32> to vector<8xf32>
    %129 = vector.shape_cast %128 : vector<8xf32> to vector<8x1xf32>
    %130 = arith.mulf %125, %125 : vector<8x128xf32>
    %cst_34 = arith.constant dense<0.000000e+00> : vector<8xf32>
    %131 = vector.multi_reduction <add>, %130, %cst_34 [1] : vector<8x128xf32> to vector<8xf32>
    %132 = vector.shape_cast %131 : vector<8xf32> to vector<8x1xf32>
    %cst_35 = arith.constant 7.812500e-03 : f32
    %133 = vector.broadcast %cst_35 : f32 to vector<8x1xf32>
    %134 = arith.mulf %129, %133 : vector<8x1xf32>
    %cst_36 = arith.constant 7.812500e-03 : f32
    %135 = vector.broadcast %cst_36 : f32 to vector<8x1xf32>
    %136 = arith.mulf %132, %135 : vector<8x1xf32>
    %137 = arith.mulf %134, %134 : vector<8x1xf32>
    %138 = arith.subf %136, %137 : vector<8x1xf32>
    %cst_37 = arith.constant 9.99999974E-6 : f32
    %139 = vector.broadcast %cst_37 : f32 to vector<8x1xf32>
    %140 = arith.addf %138, %139 : vector<8x1xf32>
    %141 = math.rsqrt %140 : vector<8x1xf32>
    %142 = arith.mulf %126, %141 : vector<8x1xf32>
    %143 = vector.broadcast %142 : vector<8x1xf32> to vector<8x128xf32>
    %144 = arith.mulf %125, %143 : vector<8x128xf32>
    %145 = arith.mulf %134, %142 : vector<8x1xf32>
    %146 = arith.subf %127, %145 : vector<8x1xf32>
    %147 = vector.broadcast %146 : vector<8x1xf32> to vector<8x128xf32>
    %148 = arith.addf %144, %147 : vector<8x128xf32>
    %cst_38 = arith.constant 0.000000e+00 : f32
    %149 = vector.broadcast %cst_38 : f32 to vector<8x128xf32>
    %150 = arith.maximumf %148, %149 : vector<8x128xf32>
    %c0_39 = arith.constant 0 : index
    %c0_40 = arith.constant 0 : index
    %151 = vector.load %arg13[%c0_39, %c0_40] : memref<128x32xf32, #tpu.memory_space<vmem>>, vector<128x32xf32>
    %152 = vector.extract_strided_slice %150 {offsets = [0, 1], sizes = [8, 127], strides = [1, 1]} : vector<8x128xf32> to vector<8x127xf32>
    %153 = vector.extract_strided_slice %150 {offsets = [0, 0], sizes = [8, 1], strides = [1, 1]} : vector<8x128xf32> to vector<8x1xf32>
    %154 = tpu.concatenate %152, %153 in 1 : vector<8x127xf32>, vector<8x1xf32> -> vector<8x128xf32>
    %155 = arith.maximumf %150, %154 : vector<8x128xf32>
    %156 = vector.extract_strided_slice %155 {offsets = [0, 8], sizes = [8, 120], strides = [1, 1]} : vector<8x128xf32> to vector<8x120xf32>
    %157 = vector.extract_strided_slice %155 {offsets = [0, 0], sizes = [8, 8], strides = [1, 1]} : vector<8x128xf32> to vector<8x8xf32>
    %158 = tpu.concatenate %156, %157 in 1 : vector<8x120xf32>, vector<8x8xf32> -> vector<8x128xf32>
    %159 = arith.maximumf %155, %158 : vector<8x128xf32>
    %cst_41 = arith.constant dense<0.000000e+00> : vector<8x32xf32>
    %160 = tpu.matmul %159, %151, %cst_41 {dimension_numbers = #tpu.dot_dimension_numbers<[1], [0], [0], [1], [0, 0, 1, 1], [], []>} : vector<8x128xf32>, vector<128x32xf32>, vector<8x32xf32> -> vector<8x32xf32>
    %161 = vector.extract_strided_slice %160 {offsets = [0, 0], sizes = [8, 16], strides = [1, 1]} : vector<8x32xf32> to vector<8x16xf32>
    %162 = vector.extract_strided_slice %161 {offsets = [0, 0], sizes = [1, 16], strides = [1, 1]} : vector<8x16xf32> to vector<1x16xf32>
    %163 = vector.extract_strided_slice %161 {offsets = [1, 0], sizes = [1, 16], strides = [1, 1]} : vector<8x16xf32> to vector<1x16xf32>
    %164 = vector.extract_strided_slice %161 {offsets = [2, 0], sizes = [1, 16], strides = [1, 1]} : vector<8x16xf32> to vector<1x16xf32>
    %165 = vector.extract_strided_slice %161 {offsets = [3, 0], sizes = [1, 16], strides = [1, 1]} : vector<8x16xf32> to vector<1x16xf32>
    %166 = vector.extract_strided_slice %161 {offsets = [4, 0], sizes = [1, 16], strides = [1, 1]} : vector<8x16xf32> to vector<1x16xf32>
    %167 = vector.extract_strided_slice %161 {offsets = [5, 0], sizes = [1, 16], strides = [1, 1]} : vector<8x16xf32> to vector<1x16xf32>
    %168 = vector.extract_strided_slice %161 {offsets = [6, 0], sizes = [1, 16], strides = [1, 1]} : vector<8x16xf32> to vector<1x16xf32>
    %169 = vector.extract_strided_slice %161 {offsets = [7, 0], sizes = [1, 16], strides = [1, 1]} : vector<8x16xf32> to vector<1x16xf32>
    %170 = tpu.concatenate %162, %163, %164, %165, %166, %167, %168, %169 in 1 : vector<1x16xf32>, vector<1x16xf32>, vector<1x16xf32>, vector<1x16xf32>, vector<1x16xf32>, vector<1x16xf32>, vector<1x16xf32>, vector<1x16xf32> -> vector<1x128xf32>
    %171 = vector.extract_strided_slice %160 {offsets = [0, 16], sizes = [8, 16], strides = [1, 1]} : vector<8x32xf32> to vector<8x16xf32>
    %172 = vector.extract_strided_slice %171 {offsets = [0, 0], sizes = [1, 16], strides = [1, 1]} : vector<8x16xf32> to vector<1x16xf32>
    %173 = vector.extract_strided_slice %171 {offsets = [1, 0], sizes = [1, 16], strides = [1, 1]} : vector<8x16xf32> to vector<1x16xf32>
    %174 = vector.extract_strided_slice %171 {offsets = [2, 0], sizes = [1, 16], strides = [1, 1]} : vector<8x16xf32> to vector<1x16xf32>
    %175 = vector.extract_strided_slice %171 {offsets = [3, 0], sizes = [1, 16], strides = [1, 1]} : vector<8x16xf32> to vector<1x16xf32>
    %176 = vector.extract_strided_slice %171 {offsets = [4, 0], sizes = [1, 16], strides = [1, 1]} : vector<8x16xf32> to vector<1x16xf32>
    %177 = vector.extract_strided_slice %171 {offsets = [5, 0], sizes = [1, 16], strides = [1, 1]} : vector<8x16xf32> to vector<1x16xf32>
    %178 = vector.extract_strided_slice %171 {offsets = [6, 0], sizes = [1, 16], strides = [1, 1]} : vector<8x16xf32> to vector<1x16xf32>
    %179 = vector.extract_strided_slice %171 {offsets = [7, 0], sizes = [1, 16], strides = [1, 1]} : vector<8x16xf32> to vector<1x16xf32>
    %180 = tpu.concatenate %172, %173, %174, %175, %176, %177, %178, %179 in 1 : vector<1x16xf32>, vector<1x16xf32>, vector<1x16xf32>, vector<1x16xf32>, vector<1x16xf32>, vector<1x16xf32>, vector<1x16xf32>, vector<1x16xf32> -> vector<1x128xf32>
    %181 = tpu.concatenate %170, %180 in 0 : vector<1x128xf32>, vector<1x128xf32> -> vector<2x128xf32>
    %c0_42 = arith.constant 0 : index
    %c0_43 = arith.constant 0 : index
    %182 = vector.load %arg14[%c0_42, %c0_43] : memref<2x128xf32, #tpu.memory_space<vmem>>, vector<2x128xf32>
    %183 = arith.mulf %181, %182 : vector<2x128xf32>
    %c0_44 = arith.constant 0 : index
    %c0_45 = arith.constant 0 : index
    %184 = vector.load %arg15[%c0_44, %c0_45] : memref<128x4xf32, #tpu.memory_space<vmem>>, vector<128x4xf32>
    %c0_46 = arith.constant 0 : index
    %c0_47 = arith.constant 0 : index
    %185 = vector.load %arg16[%c0_46, %c0_47] : memref<1x4xf32, #tpu.memory_space<vmem>>, vector<1x4xf32>
    %cst_48 = arith.constant dense<0.000000e+00> : vector<2x4xf32>
    %186 = tpu.matmul %183, %184, %cst_48 {dimension_numbers = #tpu.dot_dimension_numbers<[1], [0], [0], [1], [0, 0, 1, 1], [], []>} : vector<2x128xf32>, vector<128x4xf32>, vector<2x4xf32> -> vector<2x4xf32>
    %187 = vector.broadcast %185 : vector<1x4xf32> to vector<2x4xf32>
    %188 = arith.addf %186, %187 : vector<2x4xf32>
    %c0_49 = arith.constant 0 : index
    %c0_50 = arith.constant 0 : index
    %189 = vector.load %arg17[%c0_49, %c0_50] : memref<2x4xf32, #tpu.memory_space<vmem>>, vector<2x4xf32>
    %c0_51 = arith.constant 0 : index
    %c0_52 = arith.constant 0 : index
    %190 = vector.load %arg18[%c0_51, %c0_52] : memref<2x1xf32, #tpu.memory_space<vmem>>, vector<2x1xf32>
    %cst_53 = arith.constant dense<0xFF800000> : vector<2xf32>
    %191 = vector.multi_reduction <maximumf>, %188, %cst_53 [1] : vector<2x4xf32> to vector<2xf32>
    %192 = vector.shape_cast %191 : vector<2xf32> to vector<2x1xf32>
    %193 = vector.broadcast %192 : vector<2x1xf32> to vector<2x4xf32>
    %194 = arith.subf %188, %193 : vector<2x4xf32>
    %195 = math.exp %194 : vector<2x4xf32>
    %cst_54 = arith.constant dense<0.000000e+00> : vector<2xf32>
    %196 = vector.multi_reduction <add>, %195, %cst_54 [1] : vector<2x4xf32> to vector<2xf32>
    %197 = vector.shape_cast %196 : vector<2xf32> to vector<2x1xf32>
    %198 = vector.broadcast %197 : vector<2x1xf32> to vector<2x4xf32>
    %199 = arith.divf %195, %198 : vector<2x4xf32>
    %200 = vector.broadcast %192 : vector<2x1xf32> to vector<2x4xf32>
    %201 = arith.subf %188, %200 : vector<2x4xf32>
    %202 = math.log %197 : vector<2x1xf32>
    %203 = vector.broadcast %202 : vector<2x1xf32> to vector<2x4xf32>
    %204 = arith.subf %201, %203 : vector<2x4xf32>
    %205 = arith.mulf %204, %189 : vector<2x4xf32>
    %cst_55 = arith.constant dense<0.000000e+00> : vector<2xf32>
    %206 = vector.multi_reduction <add>, %205, %cst_55 [1] : vector<2x4xf32> to vector<2xf32>
    %207 = vector.shape_cast %206 : vector<2xf32> to vector<2x1xf32>
    %208 = arith.mulf %190, %207 : vector<2x1xf32>
    %cst_56 = arith.constant dense<0.000000e+00> : vector<1xf32>
    %209 = vector.multi_reduction <add>, %208, %cst_56 [0] : vector<2x1xf32> to vector<1xf32>
    %210 = vector.shape_cast %209 : vector<1xf32> to vector<1x1xf32>
    %cst_57 = arith.constant 0.000000e+00 : f32
    %211 = vector.broadcast %cst_57 : f32 to vector<1x1xf32>
    %212 = arith.subf %211, %210 : vector<1x1xf32>
    %c0_58 = arith.constant 0 : index
    %c0_59 = arith.constant 0 : index
    %213 = vector.load %arg19[%c0_58, %c0_59] : memref<2x4xf32, #tpu.memory_space<vmem>>, vector<2x4xf32>
    tpu.vector_store %arg19[%c0_58, %c0_59], %199 {strides = array<i32>} : memref<2x4xf32, #tpu.memory_space<vmem>>, vector<2x4xf32>,
    %c0_60 = arith.constant 0 : index
    %c0_61 = arith.constant 0 : index
    %214 = vector.load %arg20[%c0_60, %c0_61] : memref<1x1xf32, #tpu.memory_space<vmem>>, vector<1x1xf32>
    tpu.vector_store %arg20[%c0_60, %c0_61], %212 {strides = array<i32>} : memref<1x1xf32, #tpu.memory_space<vmem>>, vector<1x1xf32>,
    return
  }
  func.func @transform_0(%arg0: i32) -> (i32, i32) {
    %c0_i32 = arith.constant 0 : i32
    %c0_i32_0 = arith.constant 0 : i32
    %c0_i32_1 = arith.constant 0 : i32
    return %c0_i32, %c0_i32_0 : i32, i32
  }
  func.func @transform_1(%arg0: i32) -> (i32, i32) {
    %c0_i32 = arith.constant 0 : i32
    %c0_i32_0 = arith.constant 0 : i32
    %c0_i32_1 = arith.constant 0 : i32
    return %c0_i32, %c0_i32_0 : i32, i32
  }
  func.func @transform_2(%arg0: i32) -> (i32, i32) {
    %c0_i32 = arith.constant 0 : i32
    %c0_i32_0 = arith.constant 0 : i32
    %c0_i32_1 = arith.constant 0 : i32
    return %c0_i32, %c0_i32_0 : i32, i32
  }
  func.func @transform_3(%arg0: i32) -> (i32, i32) {
    %c0_i32 = arith.constant 0 : i32
    %c0_i32_0 = arith.constant 0 : i32
    %c0_i32_1 = arith.constant 0 : i32
    return %c0_i32, %c0_i32_0 : i32, i32
  }
  func.func @transform_4(%arg0: i32) -> (i32, i32) {
    %c0_i32 = arith.constant 0 : i32
    %c0_i32_0 = arith.constant 0 : i32
    %c0_i32_1 = arith.constant 0 : i32
    return %c0_i32, %c0_i32_0 : i32, i32
  }
  func.func @transform_5(%arg0: i32) -> (i32, i32) {
    %c0_i32 = arith.constant 0 : i32
    %c0_i32_0 = arith.constant 0 : i32
    %c0_i32_1 = arith.constant 0 : i32
    return %c0_i32, %c0_i32_0 : i32, i32
  }
  func.func @transform_6(%arg0: i32) -> (i32, i32) {
    %c0_i32 = arith.constant 0 : i32
    %c0_i32_0 = arith.constant 0 : i32
    %c0_i32_1 = arith.constant 0 : i32
    return %c0_i32, %c0_i32_0 : i32, i32
  }
  func.func @transform_7(%arg0: i32) -> (i32, i32) {
    %c0_i32 = arith.constant 0 : i32
    %c0_i32_0 = arith.constant 0 : i32
    %c0_i32_1 = arith.constant 0 : i32
    return %c0_i32, %c0_i32_0 : i32, i32
  }
  func.func @transform_8(%arg0: i32) -> (i32, i32) {
    %c0_i32 = arith.constant 0 : i32
    %c0_i32_0 = arith.constant 0 : i32
    %c0_i32_1 = arith.constant 0 : i32
    return %c0_i32, %c0_i32_0 : i32, i32
  }
  func.func @transform_9(%arg0: i32) -> (i32, i32) {
    %c0_i32 = arith.constant 0 : i32
    %c0_i32_0 = arith.constant 0 : i32
    %c0_i32_1 = arith.constant 0 : i32
    return %c0_i32, %c0_i32_0 : i32, i32
  }
  func.func @transform_10(%arg0: i32) -> (i32, i32) {
    %c0_i32 = arith.constant 0 : i32
    %c0_i32_0 = arith.constant 0 : i32
    %c0_i32_1 = arith.constant 0 : i32
    return %c0_i32, %c0_i32_0 : i32, i32
  }
  func.func @transform_11(%arg0: i32) -> (i32, i32) {
    %c0_i32 = arith.constant 0 : i32
    %c0_i32_0 = arith.constant 0 : i32
    %c0_i32_1 = arith.constant 0 : i32
    return %c0_i32, %c0_i32_0 : i32, i32
  }
  func.func @transform_12(%arg0: i32) -> (i32, i32) {
    %c0_i32 = arith.constant 0 : i32
    %c0_i32_0 = arith.constant 0 : i32
    %c0_i32_1 = arith.constant 0 : i32
    return %c0_i32, %c0_i32_0 : i32, i32
  }
  func.func @transform_13(%arg0: i32) -> (i32, i32) {
    %c0_i32 = arith.constant 0 : i32
    %c0_i32_0 = arith.constant 0 : i32
    %c0_i32_1 = arith.constant 0 : i32
    return %c0_i32, %c0_i32_0 : i32, i32
  }
  func.func @transform_14(%arg0: i32) -> (i32, i32) {
    %c0_i32 = arith.constant 0 : i32
    %c0_i32_0 = arith.constant 0 : i32
    %c0_i32_1 = arith.constant 0 : i32
    return %c0_i32, %c0_i32_0 : i32, i32
  }
  func.func @transform_15(%arg0: i32) -> (i32, i32) {
    %c0_i32 = arith.constant 0 : i32
    %c0_i32_0 = arith.constant 0 : i32
    %c0_i32_1 = arith.constant 0 : i32
    return %c0_i32, %c0_i32_0 : i32, i32
  }
  func.func @transform_16(%arg0: i32) -> (i32, i32) {
    %c0_i32 = arith.constant 0 : i32
    %c0_i32_0 = arith.constant 0 : i32
    %c0_i32_1 = arith.constant 0 : i32
    return %c0_i32, %c0_i32_0 : i32, i32
  }
  func.func @transform_17(%arg0: i32) -> (i32, i32) {
    %c0_i32 = arith.constant 0 : i32
    %c0_i32_0 = arith.constant 0 : i32
    %c0_i32_1 = arith.constant 0 : i32
    return %c0_i32, %c0_i32_0 : i32, i32
  }
  func.func @transform_18(%arg0: i32) -> (i32, i32) {
    %c0_i32 = arith.constant 0 : i32
    %c0_i32_0 = arith.constant 0 : i32
    %c0_i32_1 = arith.constant 0 : i32
    return %c0_i32, %c0_i32_0 : i32, i32
  }
  func.func @transform_19(%arg0: i32) -> (i32, i32) {
    %c0_i32 = arith.constant 0 : i32
    %c0_i32_0 = arith.constant 0 : i32
    %c0_i32_1 = arith.constant 0 : i32
    return %c0_i32, %c0_i32_0 : i32, i32
  }
}

</mosaic_0001>

<bundles_post_ra>
// kernel: fwd.1
= control target key start
LH: loop header
LB: loop body
LE: loop exit
PB: predicated region body
PF: predicated region fallthrough
CT: control target
= control target key end

     0   :  { %s3629_s0 = inlined_call_operand.vmem [shape: f32[4,512], index: 0, kind: input, shape index: {}]   ;;  %s3630_s1 = inlined_call_operand.vmem [shape: f32[8,36], index: 1, kind: input, shape index: {}]   ;;  %s3631_s2 = inlined_call_operand.vmem [shape: f32[8,1], index: 2, kind: input, shape index: {}]   ;;  %s3632_s3 = inlined_call_operand.vmem [shape: f32[9,512], index: 3, kind: input, shape index: {}]   ;;  %s3633_s4 = inlined_call_operand.vmem [shape: f32[8,1], index: 4, kind: input, shape index: {}]   ;;  %s3634_s5 = inlined_call_operand.vmem [shape: f32[8,1], index: 5, kind: input, shape index: {}]   ;;  %s3635_s6 = inlined_call_operand.vmem [shape: f32[512,128], index: 6, kind: input, shape index: {}]   ;;  %s3636_s7 = inlined_call_operand.vmem [shape: f32[8,72], index: 7, kind: input, shape index: {}]   ;;  %s3637_s8 = inlined_call_operand.vmem [shape: f32[8,1], index: 8, kind: input, shape index: {}]   ;;  %s3638_s9 = inlined_call_operand.vmem [shape: f32[9,128], index: 9, kind: input, shape index: {}]   ;;  %s3639_s10 = inlined_call_operand.vmem [shape: f32[8,1], index: 10, kind: input, shape index: {}]   ;;  %s3640_s11 = inlined_call_operand.vmem [shape: f32[8,1], index: 11, kind: input, shape index: {}]   ;;  %s3641_s12 = inlined_call_operand.vmem [shape: f32[128,32], index: 12, kind: input, shape index: {}]   ;;  %s3642_s13 = inlined_call_operand.vmem [shape: f32[2,128], index: 13, kind: input, shape index: {}]   ;;  %s3643_s14 = inlined_call_operand.vmem [shape: f32[128,4], index: 14, kind: input, shape index: {}]   ;;  %s3644_s15 = inlined_call_operand.vmem [shape: f32[1,4], index: 15, kind: input, shape index: {}]   ;;  %s3645_s16 = inlined_call_operand.vmem [shape: f32[2,4], index: 16, kind: input, shape index: {}]   ;;  %s3646_s17 = inlined_call_operand.vmem [shape: f32[2,1], index: 17, kind: input, shape index: {}]   ;;  %s3647_s18 = inlined_call_operand.hbm [shape: f32[2,4], index: 18, kind: output, shape index: {0}]   ;;  %s3648_s19 = inlined_call_operand.hbm [shape: f32[1,1], index: 19, kind: output, shape index: {1}]  }
   0x1   :  { %3656 = sst [smem:[#allocation8_spill]] %s3629_s0 }
   0x2   :  { %3657 = sst [smem:[#allocation9_spill]] %s3630_s1 }
   0x3   :  { %3658 = sst [smem:[#allocation10_spill]] %s3631_s2 }
   0x4   :  { %3659 = sst [smem:[#allocation11_spill]] %s3632_s3 }
   0x5   :  { %25 = vsyncpa [#allocation3], 0  ;;  %v81_v0 = vlaneseq  ;;  %s3660_s20 = sld [smem:[#allocation11_spill]] }
   0x7   :  { %v2649_v1 = vshrl.u32 %v81_v0, 7 }
   0x9   :  { %v2662_v4 = vsub.s32 1, %v2649_v1 }
   0xb   :  { %v2654_v2 = vld [vmem:[%s3660_s20 + $0x10] sm:$0xff]  ;;  %v2659_v3 = vld [vmem:[%s3660_s20] sm:$0xff]  ;;  %v2667_v5 = vld [vmem:[%s3660_s20 + $0x18] sm:$0xff] }
   0xc   :  { %v2672_v6 = vld [vmem:[%s3660_s20 + $0x8] sm:$0xff] }
   0xd   :  { %26 = vsyncpa [#allocation5], 0  ;;  %v134_v7 = vrot.slane %v2654_v2, %v2662_v4  ;;  %v126_v8 = vrot.slane %v2659_v3, %v2662_v4  ;;  %s2519_s25 = smov 112   ;;  %v138_v9 = vrot.slane %v2667_v5, %v2662_v4  ;;  %v130_v10 = vrot.slane %v2672_v6, %v2662_v4  ;;  %s2520_s3 = smov 127   ;;  %v1864_v33 = vld [vmem:[%s3660_s20 + $0x20] ss:$0 sm:$0xff] }
   0xe   :  { %v2685_v11 = vsub.s32 3, %v2649_v1  ;;  %v2700_v16 = vsub.s32 2, %v2649_v1  ;;  %s2521_s26 = smov 113   ;;  %v2713_v21 = vsub.s32 5, %v2649_v1  ;;  %v2720_v24 = vsub.s32 7, %v2649_v1  ;;  %s2522_s27 = smov 1  }
   0xf   :  { %147 = vrot.lane.b32.xlu1 %v134_v7, %s2519_s25  ;;  %143 = vrot.lane.b32.xlu0 %v126_v8, %s2519_s25  ;;  %s3653_s28 = smov 16   ;;  %v2735_v29 = vsub.s32 6, %v2649_v1  ;;  %s2524_s29 = smov 15   ;;  %v1866_v34 = vld [vmem:[%s3660_s20 + $0x30] ss:$0 sm:$0xff]  ;;  %v2762_v38 = vsub.s32 4, %v2649_v1 }
  0x10   :  { %v214_v12 = vrot.slane %v2672_v6, %v2685_v11  ;;  %v210_v13 = vrot.slane %v2659_v3, %v2685_v11  ;;  %v222_v14 = vrot.slane %v2667_v5, %v2685_v11  ;;  %v218_v15 = vrot.slane %v2654_v2, %v2685_v11  ;;  %s2525_s21 = smov 17   ;;  %v1865_v35 = vld [vmem:[%s3660_s20 + $0x28] ss:$0 sm:$0xff]  ;;  %s3661_s0 = sld [smem:[#allocation8_spill]]  ;;  %v1867_v44 = vld [vmem:[%s3660_s20 + $0x38] ss:$0 sm:$0xff] }
  0x11   :  { %v172_v17 = vrot.slane %v2672_v6, %v2700_v16  ;;  %v168_v18 = vrot.slane %v2659_v3, %v2700_v16  ;;  %v180_v19 = vrot.slane %v2667_v5, %v2700_v16  ;;  %v176_v20 = vrot.slane %v2654_v2, %v2700_v16  ;;  %s3655_s20 = smov 111   ;;  %s3651_s23 = smov 96  }
  0x12   :  { %v276_v22 = vrot.slane %v2672_v6, %v2713_v21  ;;  %v272_v23 = vrot.slane %v2659_v3, %v2713_v21  ;;  %v356_v25 = vrot.slane %v2659_v3, %v2720_v24  ;;  %v280_v26 = vrot.slane %v2654_v2, %v2713_v21  ;;  %s2529_s24 = smov 110   ;;  %s3662_s22 = sld [smem:[#allocation10_spill]] }
  0x13   :  { %149 = vrot.lane.b32.xlu1 %v138_v9, %s2519_s25  ;;  %145 = vrot.lane.b32.xlu0 %v130_v10, %s2519_s25  ;;  %v364_v27 = vrot.slane %v2654_v2, %v2720_v24  ;;  %v360_v28 = vrot.slane %v2672_v6, %v2720_v24  ;;  %v318_v30 = vrot.slane %v2672_v6, %v2735_v29  ;;  %v2770_v40 = vsub.s32 0, %v2649_v1  ;;  %s2535_s2 = smov 120   ;;  %s2543_s1 = smov 32  }
  0x14   :  { %v314_v31 = vrot.slane %v2659_v3, %v2735_v29  ;;  %v322_v32 = vrot.slane %v2654_v2, %v2735_v29  ;;  %v368_v36 = vrot.slane %v2667_v5, %v2720_v24  ;;  %v284_v37 = vrot.slane %v2667_v5, %v2713_v21 }
  0x15   :  { %v326_v41 = vrot.slane %v2667_v5, %v2735_v29  ;;  %v252_v42 = vrot.slane %v2659_v3, %v2762_v38  ;;  %v256_v43 = vrot.slane %v2672_v6, %v2762_v38  ;;  %v88_v47 = vrot.slane %v2672_v6, %v2770_v40 }
  0x16   :  { %v2767_v39 = vld [vmem:[%s3661_s0] sm:$0xff]  ;;  %v2790_v46 = vld [vmem:[%s3661_s0 + $0x8] sm:$0xff]  ;;  %v84_v48 = vrot.slane %v2659_v3, %v2770_v40  ;;  %v260_v49 = vrot.slane %v2654_v2, %v2762_v38  ;;  %v264_v52 = vrot.slane %v2667_v5, %v2762_v38  ;;  %v92_v54 = vrot.slane %v2654_v2, %v2770_v40  ;;  %s2531_s0 = smov 94  }
  0x17   :  { %229 = vrot.lane.b32.xlu1 %v214_v12, %s2520_s3  ;;  %227 = vrot.lane.b32.xlu0 %v210_v13, %s2520_s3  ;;  %v2785_v45 = vcombine.high %v2767_v39, %v2767_v39  ;;  %v265_v50 = vmul.f32 %v252_v42, %v2767_v39  ;;  %v2805_v53 = vcombine.high %v2790_v46, %v2790_v46  ;;  %vm193_vm0 = vcmask 924672  }
  0x18   :  { %v267_v56 = vmul.f32 %v260_v49, %v2790_v46  ;;  %v96_v58 = vrot.slane %v2667_v5, %v2770_v40  ;;  %vm151_vm1 = vcmask 916480   ;;  %vm339_vm2 = vcmask 121856  }
  0x19   :  { %v266_v51 = vmul.f32 %v256_v43, %v2785_v45  ;;  %v268_v57 = vmul.f32 %v264_v52, %v2805_v53  ;;  %vm235_vm3 = vcmask 1039360   ;;  %vm297_vm4 = vcmask 7168  }
  0x1a   :  { %vm381_vm5 = vcmask 130048   ;;  %vm423_vm6 = vcmask 138240   ;;  %vm481_vm7 = vcmask 1031168   ;;  %vm645_vm8 = vcmask 1043456  }
  0x1b   :  { %233 = vrot.lane.b32.xlu1 %v222_v14, %s2520_s3  ;;  %231 = vrot.lane.b32.xlu0 %v218_v15, %s2520_s3  ;;  %v2252_v55 = vpack.i.bf16 %v266_v51, %v265_v50  ;;  %v2257_v59 = vpack.i.bf16 %v268_v57, %v267_v56  ;;  %vm560_vm9 = vcmask 900096   ;;  %vm109_vm10 = vcmask 908288  }
  0x1c   :  { %vm640_vm11 = vcmask 769024   ;;  %vm585_vm12 = vcmask 785408   ;;  %vm615_vm13 = vcmask 777216   ;;  %vm777_vm14 = vcmask 293888  }
  0x1d   :  { %vm1352_vm15 = vcmask 965632  }
  0x1f   :  { %187 = vrot.lane.b32.xlu1 %v172_v17, %s2521_s26  ;;  %185 = vrot.lane.b32.xlu0 %v168_v18, %s2521_s26 }
  0x23   :  { %191 = vrot.lane.b32.xlu1 %v180_v19, %s2521_s26  ;;  %189 = vrot.lane.b32.xlu0 %v176_v20, %s2521_s26  ;;  %s2530_s26 = smov 95  }
  0x27   :  { %291 = vrot.lane.b32.xlu1 %v276_v22, %s2522_s27  ;;  %289 = vrot.lane.b32.xlu0 %v272_v23, %s2522_s27 }
  0x2b   :  { %373 = vrot.lane.b32.xlu1 %v356_v25, %s3653_s28  ;;  %293 = vrot.lane.b32.xlu0 %v280_v26, %s2522_s27 }
  0x2f   :  { %377 = vrot.lane.b32.xlu1 %v364_v27, %s3653_s28  ;;  %375 = vrot.lane.b32.xlu0 %v360_v28, %s3653_s28 }
  0x33   :  { %333 = vrot.lane.b32.xlu1 %v318_v30, %s2524_s29  ;;  %331 = vrot.lane.b32.xlu0 %v314_v31, %s2524_s29 }
  0x37   :  { %415 = vrot.lane.b32.xlu1 %v1864_v33, %s2525_s21  ;;  %335 = vrot.lane.b32.xlu0 %v322_v32, %s2524_s29 }
  0x3b   :  { %419 = vrot.lane.b32.xlu1 %v1866_v34, %s2525_s21  ;;  %417 = vrot.lane.b32.xlu0 %v1865_v35, %s2525_s21 }
  0x3f   :  { %379 = vrot.lane.b32.xlu1 %v368_v36, %s3653_s28  ;;  %295 = vrot.lane.b32.xlu0 %v284_v37, %s2522_s27 }
  0x43   :  { %337 = vrot.lane.b32.xlu0 %v326_v41, %s2524_s29  ;;  %421 = vrot.lane.b32.xlu1 %v1867_v44, %s2525_s21  ;;  %s2527_s29 = smov 126  }
  0x47   :  { %103 = vrot.lane.b32.xlu1 %v88_v47, %s3655_s20  ;;  %101 = vrot.lane.b32.xlu0 %v84_v48, %s3655_s20 }
  0x4b   :  { %2253 = vrot.lane.b32.xlu1 %v2252_v55, %s3655_s20  ;;  %105 = vrot.lane.b32.xlu0 %v92_v54, %s3655_s20 }
  0x4f   :  { %107 = vrot.lane.b32.xlu1 %v96_v58, %s3655_s20  ;;  %2258 = vrot.lane.b32.xlu0 %v2257_v59, %s3655_s20 }
  0x81   :  { %v148_v60 = vpop.permute.xlu1 %147  ;;  %v2819_v61 = vpop.permute.xlu0 %143 }
  0x85   :  { %v150_v62 = vpop.permute.xlu1 %149  ;;  %v146_v63 = vpop.permute.xlu0 %145 }
  0x86   :  { %v152_v30 = vsel %vm151_vm1, %v2819_v61, %v146_v63  ;;  %v153_v31 = vsel %vm151_vm1, %v146_v63, %v148_v60  ;;  %v164_v55 = vmul.f32 %v150_v62, %v2805_v53  ;;  %v154_v57 = vsel %vm151_vm1, %v148_v60, %v150_v62 }
  0x87   :  { %v161_v32 = vmul.f32 %v152_v30, %v2767_v39  ;;  %v162_v33 = vmul.f32 %v153_v31, %v2785_v45  ;;  %v160_v62 = vmul.f32 0.0, %v2819_v61 }
  0x88   :  { %v446_v60 = vrot.slane %v164_v55, 4 }
  0x89   :  { %v230_v0 = vpop.permute.xlu1 %229  ;;  %v2821_v1 = vpop.permute.xlu0 %227  ;;  %v443_v47 = vrot.slane %v161_v32, 4  ;;  %v444_v48 = vrot.slane %v162_v33, 4  ;;  %v442_v30 = vrot.slane %v160_v62, 4 }
  0x8a   :  { %v236_v42 = vsel %vm235_vm3, %v2821_v1, %v230_v0 }
  0x8b   :  { %v245_v51 = vmul.f32 %v236_v42, %v2767_v39 }
  0x8d   :  { %v2823_v2 = vpop.permute.xlu1 %233  ;;  %v2825_v3 = vpop.permute.xlu0 %231 }
  0x8e   :  { %v237_v34 = vsel %vm235_vm3, %v230_v0, %v2825_v3 }
  0x8f   :  { %v246_v44 = vmul.f32 %v237_v34, %v2785_v45 }
  0x91   :  { %v188_v6 = vpop.permute.xlu1 %187  ;;  %v186_v5 = vpop.permute.xlu0 %185  ;;  %v498_v58 = vrot.slane %v246_v44, 4 }
  0x92   :  { %v194_v7 = vsel %vm193_vm0, %v186_v5, %v188_v6  ;;  %v202_v14 = vmul.f32 0.0, %v186_v5  ;;  %v497_v5 = vrot.slane %v245_v51, 4 }
  0x93   :  { %v203_v15 = vmul.f32 %v194_v7, %v2767_v39 }
  0x95   :  { %v192_v8 = vpop.permute.xlu1 %191  ;;  %v190_v9 = vpop.permute.xlu0 %189 }
  0x96   :  { %v206_v10 = vmul.f32 %v192_v8, %v2805_v53  ;;  %v195_v12 = vsel %vm193_vm0, %v188_v6, %v190_v9  ;;  %v196_v13 = vsel %vm193_vm0, %v190_v9, %v192_v8  ;;  %v2277_v6 = vpack.i.bf16 %v444_v48, %v443_v47 }
  0x97   :  { %v204_v17 = vmul.f32 %v195_v12, %v2785_v45  ;;  %v205_v18 = vmul.f32 %v196_v13, %v2790_v46  ;;  %v163_v8 = vmul.f32 %v154_v57, %v2790_v46  ;;  %v248_v9 = vmul.f32 %v2823_v2, %v2805_v53 }
  0x98   :  { %479 = vrot.lane.b32.xlu1 %v206_v10, %s2527_s29  ;;  %v238_v10 = vsel %vm235_vm3, %v2825_v3, %v2823_v2  ;;  %v2287_v12 = vpack.i.bf16 %v498_v58, %v497_v5  ;;  %v244_v3 = vmul.f32 0.0, %v2821_v1  ;;  %vm1341_vm0 = vcmask 982016  }
  0x99   :  { %v2832_v19 = vpop.permute.xlu1 %291  ;;  %v290_v20 = vpop.permute.xlu0 %289  ;;  %v2267_v22 = vpack.i.bf16 %v202_v14, %v205_v18  ;;  %v2262_v23 = vpack.i.bf16 %v204_v17, %v203_v15  ;;  %v500_v61 = vrot.slane %v248_v9, 4 }
  0x9a   :  { %v298_v52 = vsel %vm297_vm4, %v290_v20, %v2832_v19  ;;  %v306_v59 = vmul.f32 %v290_v20, %v2767_v39 }
  0x9b   :  { %2268 = vrot.lane.b32.xlu0 %v2267_v22, %s2527_s29  ;;  %v307_v63 = vmul.f32 %v298_v52, %v2785_v45  ;;  %v445_v22 = vrot.slane %v163_v8, 4 }
  0x9c   :  { %2263 = vrot.lane.b32.xlu1 %v2262_v23, %s2527_s29  ;;  %v545_v13 = vrot.slane %v306_v59, 4  ;;  %v247_v23 = vmul.f32 %v238_v10, %v2790_v46 }
  0x9d   :  { %v374_v25 = vpop.permute.xlu1 %373  ;;  %v2836_v26 = vpop.permute.xlu0 %293  ;;  %v546_v14 = vrot.slane %v307_v63, 4 }
  0x9e   :  { %v390_v15 = vmul.f32 %v374_v25, %v2767_v39  ;;  %v299_v33 = vsel %vm297_vm4, %v2832_v19, %v2836_v26  ;;  %v499_v34 = vrot.slane %v247_v23, 4 }
  0x9f   :  { %v2297_v32 = vpack.i.bf16 %v546_v14, %v545_v13  ;;  %v308_v1 = vmul.f32 %v299_v33, %v2790_v46 }
  0xa0   :  { %v600_v31 = vrot.slane %v390_v15, 4 }
  0xa1   :  { %v2838_v27 = vpop.permute.xlu1 %377  ;;  %v2840_v28 = vpop.permute.xlu0 %375  ;;  %v547_v48 = vrot.slane %v308_v1, 4 }
  0xa2   :  { %v382_v7 = vsel %vm381_vm5, %v374_v25, %v2840_v28 }
  0xa3   :  { %v391_v17 = vmul.f32 %v382_v7, %v2785_v45 }
  0xa5   :  { %v334_v35 = vpop.permute.xlu1 %333  ;;  %v332_v36 = vpop.permute.xlu0 %331  ;;  %v601_v25 = vrot.slane %v391_v17, 4 }
  0xa6   :  { %v340_v37 = vsel %vm339_vm2, %v332_v36, %v334_v35  ;;  %v348_v41 = vmul.f32 %v332_v36, %v2767_v39 }
  0xa7   :  { %v349_v43 = vmul.f32 %v340_v37, %v2785_v45  ;;  %v2282_v37 = vpack.i.bf16 %v442_v30, %v445_v22  ;;  %v2307_v42 = vpack.i.bf16 %v601_v25, %v600_v31 }
  0xa9   :  { %v2855_v49 = vpop.permute.xlu0 %335  ;;  %v2272_v50 = vpack.i.bf16 %v349_v43, %v348_v41  ;;  %v416_v18 = vpop.permute.xlu1 %415  ;;  %v496_v41 = vrot.slane %v244_v3, 4 }
  0xaa   :  { %v341_v54 = vsel %vm339_vm2, %v334_v35, %v2855_v49  ;;  %v432_v43 = vmul.f32 %v416_v18, %v2767_v39 }
  0xab   :  { %2273 = vrot.lane.b32.xlu1 %v2272_v50, %s3651_s23  ;;  %v350_v56 = vmul.f32 %v341_v54, %v2790_v46  ;;  %v2292_v19 = vpack.i.bf16 %v496_v41, %v499_v34 }
  0xad   :  { %v2868_v0 = vpop.permute.xlu0 %417  ;;  %579 = vrot.lane.b32.xlu0 %v350_v56, %s3651_s23  ;;  %v420_v35 = vpop.permute.xlu1 %419 }
  0xae   :  { %v425_v51 = vsel %vm423_vm6, %v2868_v0, %v420_v35  ;;  %v424_v59 = vsel %vm423_vm6, %v416_v18, %v2868_v0 }
  0xaf   :  { %2278 = vrot.lane.b32.xlu1 %v2277_v6, %s2520_s3  ;;  %v433_v7 = vmul.f32 %v424_v59, %v2785_v45 }
  0xb1   :  { %v296_v20 = vpop.permute.xlu0 %295  ;;  %455 = vrot.lane.b32.xlu0 %v446_v60, %s2520_s3  ;;  %v380_v50 = vpop.permute.xlu1 %379 }
  0xb2   :  { %v300_v2 = vsel %vm297_vm4, %v2836_v26, %v296_v20  ;;  %v383_v26 = vsel %vm381_vm5, %v2840_v28, %v2838_v27  ;;  %v434_v28 = vmul.f32 %v425_v51, %v2790_v46  ;;  %v384_v63 = vsel %vm381_vm5, %v2838_v27, %v380_v50 }
  0xb3   :  { %2288 = vrot.lane.b32.xlu1 %v2287_v12, %s2519_s25  ;;  %v309_v36 = vmul.f32 %v300_v2, %v2805_v53  ;;  %v392_v55 = vmul.f32 %v383_v26, %v2790_v46  ;;  %v393_v8 = vmul.f32 %v384_v63, %v2805_v53  ;;  %v394_v9 = vmul.f32 0.0, %v380_v50 }
  0xb4   :  { %v310_v60 = vmul.f32 0.0, %v296_v20  ;;  %vm1434_vm4 = vcmask 588800  }
  0xb5   :  { %509 = vrot.lane.b32.xlu0 %v500_v61, %s2519_s25  ;;  %v548_v44 = vrot.slane %v309_v36, 4  ;;  %v338_v47 = vpop.permute.xlu0 %337  ;;  %v422_v58 = vpop.permute.xlu1 %421  ;;  %v603_v62 = vrot.slane %v393_v8, 4  ;;  %v604_v10 = vrot.slane %v394_v9, 4 }
  0xb6   :  { %v342_v52 = vsel %vm339_vm2, %v2855_v49, %v338_v47  ;;  %v352_v57 = vmul.f32 0.0, %v338_v47  ;;  %v602_v49 = vrot.slane %v392_v55, 4  ;;  %v426_v6 = vsel %vm423_vm6, %v420_v35, %v422_v58 }
  0xb7   :  { %2298 = vrot.lane.b32.xlu1 %v2297_v32, %s2529_s24  ;;  %v2302_v54 = vpack.i.bf16 %v548_v44, %v547_v48  ;;  %v351_v56 = vmul.f32 %v342_v52, %v2805_v53  ;;  %v435_v0 = vmul.f32 %v426_v6, %v2805_v53  ;;  %v549_v27 = vrot.slane %v310_v60, 4 }
  0xb8   :  { %v2317_v12 = vpack.i.bf16 %v604_v10, %v603_v62  ;;  %v436_v13 = vmul.f32 0.0, %v422_v58  ;;  %vm2542_vm2 = vmmov 0  }
  0xb9   :  { %2283 = vrot.lane.b32.xlu0 %v2282_v37, %s2520_s3  ;;  %v2312_v5 = vpack.i.bf16 %v352_v57, %v351_v56  ;;  %v104_v14 = vpop.permute.xlu1 %103  ;;  %v2928_v17 = vpop.permute.xlu0 %101 }
  0xbb   :  { %2308 = vrot.lane.b32.xlu1 %v2307_v42, %s2530_s26 }
  0xbd   :  { %2293 = vrot.lane.b32.xlu0 %v2292_v19, %s2519_s25  ;;  %v2254_v15 = vpop.permute.xlu1 %2253  ;;  %v2932_v20 = vpop.permute.xlu0 %105 }
  0xbe   :  { %v2255_v47 = vunpack.i.l.bf16 %v2254_v15 }
  0xbf   :  { %630 = vrot.lane.b32.xlu1 %v432_v43, %s2531_s0 }
  0xc1   :  { %2303 = vrot.lane.b32.xlu0 %v2302_v54, %s2529_s24  ;;  %v2930_v18 = vpop.permute.xlu1 %107  ;;  %v2936_v23 = vpop.permute.xlu0 %2258  ;;  %v2256_v54 = vunpack.i.h.bf16 %v2254_v15 }
  0xc2   :  { %v2260_v55 = vunpack.i.l.bf16 %v2936_v23 }
  0xc3   :  { %634 = vrot.lane.b32.xlu1 %v434_v28, %s2531_s0 }
  0xc5   :  { %609 = vrot.lane.b32.xlu0 %v602_v49, %s2530_s26 }
  0xc7   :  { %2313 = vrot.lane.b32.xlu1 %v2312_v5, %s3651_s23  ;;  %s2539_s23 = smov 9  }
  0xc9   :  { %632 = vrot.lane.b32.xlu0 %v433_v7, %s2531_s0 }
  0xcb   :  { %636 = vrot.lane.b32.xlu1 %v435_v0, %s2531_s0  ;;  %v111_v0 = vsel %vm109_vm10, %v104_v14, %v2932_v20 }
  0xcd   :  { %558 = vrot.lane.b32.xlu0 %v549_v27, %s2529_s24  ;;  %v532_v27 = vsel %vm109_vm10, %v2255_v47, %v2256_v54 }
  0xd1   :  { %2318 = vrot.lane.b32.xlu0 %v2317_v12, %s2530_s26  ;;  %v533_v12 = vsel %vm109_vm10, %v2256_v54, %v2260_v55  ;;  %s3663_s26 = sld [smem:[#allocation9_spill]] }
  0xd5   :  { %638 = vrot.lane.b32.xlu0 %v436_v13, %s2531_s0  ;;  %s2537_s0 = smov 7  }
 0x10a   :  { %v2934_v22 = vpop.permute.xlu1 %479 }
 0x10d   :  { %v2940_v30 = vpop.permute.xlu0 %2268 }
 0x10e   :  { %v2938_v61 = vpop.permute.xlu1 %2263  ;;  %v2270_v42 = vunpack.i.l.bf16 %v2940_v30 }
 0x10f   :  { %v2266_v43 = vunpack.i.h.bf16 %v2938_v61  ;;  %v2265_v44 = vunpack.i.l.bf16 %v2938_v61 }
 0x111   :  { %v484_v28 = vsel %vm481_vm7, %v2266_v43, %v2270_v42  ;;  %v483_v58 = vsel %vm481_vm7, %v2265_v44, %v2266_v43 }
 0x11d   :  { %v2942_v2 = vpop.permute.xlu1 %2273 }
 0x11e   :  { %v2275_v19 = vunpack.i.l.bf16 %v2942_v2 }
 0x11f   :  { %v2944_v3 = vpop.permute.xlu0 %579 }
 0x121   :  { %v2946_v31 = vpop.permute.xlu1 %2278 }
 0x122   :  { %v2281_v13 = vunpack.i.h.bf16 %v2946_v31  ;;  %v2280_v15 = vunpack.i.l.bf16 %v2946_v31  ;;  %v120_v31 = vmul.f32 %v111_v0, %v2785_v45  ;;  %v485_v45 = vsel %vm481_vm7, %v2270_v42, %v2934_v22 }
 0x123   :  { %v2948_v25 = vpop.permute.xlu0 %455  ;;  %v2261_v0 = vunpack.i.h.bf16 %v2936_v23 }
 0x125   :  { %v2950_v32 = vpop.permute.xlu1 %2288 }
 0x126   :  { %v2291_v36 = vunpack.i.h.bf16 %v2950_v32  ;;  %v2290_v37 = vunpack.i.l.bf16 %v2950_v32 }
 0x127   :  { %v2952_v33 = vpop.permute.xlu0 %509 }
 0x128   :  { %v512_v50 = vsel %vm151_vm1, %v2290_v37, %v2291_v36 }
 0x129   :  { %v2299_v34 = vpop.permute.xlu1 %2298  ;;  %v652_v6 = vsel %vm645_vm8, %v483_v58, %v512_v50 }
 0x12a   :  { %v2300_v41 = vunpack.i.l.bf16 %v2299_v34  ;;  %v2301_v51 = vunpack.i.h.bf16 %v2299_v34 }
 0x12b   :  { %v2954_v35 = vpop.permute.xlu0 %2283 }
 0x12c   :  { %v656_v56 = vsel %vm645_vm8, %v2255_v47, %v2300_v41  ;;  %v561_v7 = vsel %vm560_vm9, %v2300_v41, %v2301_v51  ;;  %v2285_v60 = vunpack.i.l.bf16 %v2954_v35  ;;  %v110_v41 = vsel %vm109_vm10, %v2928_v17, %v104_v14 }
 0x12d   :  { %v2958_v1 = vpop.permute.xlu1 %2308  ;;  %v657_v34 = vsel %vm645_vm8, %v532_v27, %v561_v7  ;;  %v2271_v47 = vunpack.i.h.bf16 %v2940_v30  ;;  %v2286_v54 = vunpack.i.h.bf16 %v2954_v35  ;;  %v119_v14 = vmul.f32 %v110_v41, %v2767_v39 }
 0x12e   :  { %v2310_v26 = vunpack.i.l.bf16 %v2958_v1  ;;  %v459_v50 = vsel %vm235_vm3, %v2281_v13, %v2285_v60  ;;  %v2311_v7 = vunpack.i.h.bf16 %v2958_v1  ;;  %v655_v27 = vsel %vm645_vm8, %v2934_v22, %v2952_v33 }
 0x12f   :  { %v2294_v48 = vpop.permute.xlu0 %2293  ;;  %v648_v58 = vsel %vm645_vm8, %v120_v31, %v459_v50  ;;  %v112_v31 = vsel %vm109_vm10, %v2932_v20, %v2930_v18 }
 0x130   :  { %v2295_v52 = vunpack.i.l.bf16 %v2294_v48  ;;  %v661_v57 = vsel %vm645_vm8, %v2275_v19, %v2310_v26  ;;  %v616_v22 = vsel %vm615_vm13, %v2310_v26, %v2311_v7 }
 0x131   :  { %v2322_v49 = vpack.i.bf16 %v661_v57, %v656_v56  ;;  %v2985_v62 = vpop.permute.xlu1 %630  ;;  %v458_v56 = vsel %vm235_vm3, %v2280_v15, %v2281_v13 }
 0x132   :  { %v513_v59 = vsel %vm151_vm1, %v2291_v36, %v2295_v52 }
 0x133   :  { %v2304_v63 = vpop.permute.xlu0 %2303  ;;  %v653_v5 = vsel %vm645_vm8, %v484_v28, %v513_v59  ;;  %2323 = vrot.lane.b32.xlu0 %v2322_v49, %s2525_s21  ;;  %v514_v28 = vsel %vm151_vm1, %v2295_v52, %v2952_v33  ;;  %v482_v59 = vsel %vm481_vm7, %v2271_v47, %v2265_v44  ;;  %v2276_v52 = vunpack.i.h.bf16 %v2942_v2 }
 0x134   :  { %v2305_v8 = vunpack.i.l.bf16 %v2304_v63  ;;  %v2332_v9 = vpack.i.bf16 %v653_v5, %v652_v6  ;;  %v457_v49 = vsel %vm235_vm3, %v2286_v54, %v2280_v15  ;;  %v2306_v6 = vunpack.i.h.bf16 %v2304_v63 }
 0x135   :  { %v635_v30 = vpop.permute.xlu1 %634  ;;  %v647_v5 = vsel %vm645_vm8, %v119_v14, %v458_v56  ;;  %v654_v32 = vsel %vm645_vm8, %v485_v45, %v514_v28  ;;  %v586_v47 = vsel %vm585_vm12, %v2275_v19, %v2276_v52  ;;  %v460_v2 = vsel %vm235_vm3, %v2285_v60, %v2948_v25 }
 0x136   :  { %v562_v10 = vsel %vm560_vm9, %v2301_v51, %v2305_v8  ;;  %v2296_v51 = vunpack.i.h.bf16 %v2294_v48  ;;  %v2327_v44 = vpack.i.bf16 %v648_v58, %v647_v5  ;;  %v563_v13 = vsel %vm560_vm9, %v2305_v8, %v2306_v6 }
 0x137   :  { %v2994_v61 = vpop.permute.xlu0 %609  ;;  %v658_v36 = vsel %vm645_vm8, %v533_v12, %v562_v10  ;;  %2333 = vrot.lane.b32.xlu0 %v2332_v9, %s2525_s21  ;;  %v2357_v15 = vpack.i.bf16 %v655_v27, %v654_v32  ;;  %v534_v8 = vsel %vm109_vm10, %v2260_v55, %v2261_v0  ;;  %v662_v26 = vsel %vm645_vm8, %v586_v47, %v616_v22 }
 0x138   :  { %v2342_v43 = vpack.i.bf16 %v658_v36, %v657_v34  ;;  %v511_v39 = vsel %vm151_vm1, %v2296_v51, %v2290_v37  ;;  %v118_v37 = vmul.f32 0.0, %v2928_v17  ;;  %v617_v12 = vsel %vm615_vm13, %v2311_v7, %v2994_v61 }
 0x139   :  { %v651_v63 = vsel %vm645_vm8, %v482_v59, %v511_v39  ;;  %v2314_v17 = vpop.permute.xlu1 %2313  ;;  %v587_v36 = vsel %vm585_vm12, %v2276_v52, %v2944_v3  ;;  %v659_v50 = vsel %vm645_vm8, %v534_v8, %v563_v13  ;;  %v121_v56 = vmul.f32 %v112_v31, %v2790_v46 }
 0x13a   :  { %v646_v34 = vsel %vm645_vm8, %v118_v37, %v457_v49  ;;  %v663_v33 = vsel %vm645_vm8, %v587_v36, %v617_v12  ;;  %v2316_v14 = vunpack.i.h.bf16 %v2314_v17  ;;  %v2315_v20 = vunpack.i.l.bf16 %v2314_v17 }
 0x13b   :  { %v633_v57 = vpop.permute.xlu0 %632  ;;  %2343 = vrot.lane.b32.xlu0 %v2342_v43, %s2525_s21  ;;  %v2337_v43 = vpack.i.bf16 %v651_v63, %v646_v34  ;;  %v2347_v54 = vpack.i.bf16 %v663_v33, %v662_v26  ;;  %v649_v35 = vsel %vm645_vm8, %v121_v56, %v460_v2  ;;  %v2533_v39 = vmov 0  }
 0x13c   :  { %v641_v48 = vsel %vm640_vm11, %v2985_v62, %v633_v57  ;;  %v642_v42 = vsel %vm640_vm11, %v633_v57, %v635_v30  ;;  %v2532_v57 = vmov 0.0   ;;  %2372 = vset.pattern.permute.xlu0 %v2533_v39  ;;  %2373 = vset.pattern.permute.xlu1 %v2533_v39 }
 0x13d   :  { %733 = vrot.lane.b32.xlu1 %v641_v48, %s2525_s21  ;;  %v637_v23 = vpop.permute.xlu1 %636  ;;  %853 = vmatprep.mubr.f32.mxu1 %v2532_v57  ;;  %v122_v48 = vmul.f32 %v2930_v18, %v2805_v53  ;;  %v589_v53 = vsel %vm585_vm12, %v2315_v20, %v2316_v14 }
 0x13e   :  { %v643_v28 = vsel %vm640_vm11, %v635_v30, %v637_v23  ;;  %v588_v30 = vsel %vm585_vm12, %v2944_v3, %v2315_v20 }
 0x13f   :  { %v559_v9 = vpop.permute.xlu0 %558  ;;  %735 = vrot.lane.b32.xlu0 %v642_v42, %s2525_s21  ;;  %v650_v46 = vsel %vm645_vm8, %v122_v48, %v2948_v25 }
 0x140   :  { %v564_v10 = vsel %vm560_vm9, %v2306_v6, %v559_v9  ;;  %v2352_v18 = vpack.i.bf16 %v650_v46, %v649_v35  ;;  %v65_v35 = vld [vmem:[%s3663_s26] sm:$0xff]  ;;  %s2536_s26 = smov 8  }
 0x141   :  { %2328 = vrot.lane.b32.xlu1 %v2327_v44, %s2525_s21  ;;  %v660_v41 = vsel %vm645_vm8, %v2261_v0, %v564_v10 }
 0x142   :  { %v2362_v1 = vpack.i.bf16 %v660_v41, %v659_v50 }
 0x143   :  { %2358 = vrot.lane.b32.xlu0 %v2357_v15, %s2525_s21  ;;  %v2319_v51 = vpop.permute.xlu0 %2318 }
 0x144   :  { %v2321_v19 = vunpack.i.h.bf16 %v2319_v51  ;;  %v2320_v55 = vunpack.i.l.bf16 %v2319_v51 }
 0x145   :  { %2338 = vrot.lane.b32.xlu1 %v2337_v43, %s2525_s21 }
 0x146   :  { %v618_v60 = vsel %vm615_vm13, %v2994_v61, %v2320_v55  ;;  %v619_v58 = vsel %vm615_vm13, %v2320_v55, %v2321_v19 }
 0x147   :  { %2363 = vrot.lane.b32.xlu0 %v2362_v1, %s2525_s21  ;;  %v664_v45 = vsel %vm645_vm8, %v588_v30, %v618_v60  ;;  %v665_v59 = vsel %vm645_vm8, %v589_v53, %v619_v58  ;;  %v639_v25 = vpop.permute.xlu0 %638 }
 0x148   :  { %v2367_v61 = vpack.i.bf16 %v665_v59, %v664_v45  ;;  %v644_v3 = vsel %vm640_vm11, %v637_v23, %v639_v25 }
 0x149   :  { %2348 = vrot.lane.b32.xlu1 %v2347_v54, %s2525_s21 }
 0x14b   :  { %737 = vrot.lane.b32.xlu0 %v643_v28, %s2525_s21 }
 0x14d   :  { %731 = vrot.lane.b32.xlu1 %v2985_v62, %s2525_s21  ;;  %v66_v62 = vld [vmem:[%s3662_s22] sm:$0xff] }
 0x14f   :  { %668 = vperm.xlu0 %2372, %v66_v62  }
 0x151   :  { %2353 = vrot.lane.b32.xlu1 %v2352_v18, %s2525_s21 }
 0x155   :  { %2368 = vrot.lane.b32.xlu1 %v2367_v61, %s2525_s21 }
 0x159   :  { %739 = vrot.lane.b32.xlu1 %v644_v3, %s2525_s21  ;;  %s2534_s21 = smov 121  }
 0x1a5   :  { %v2324_v52 = vpop.permute.xlu0 %2323 }
 0x1a6   :  { %v2326_v22 = vunpack.i.h.bf16 %v2324_v52  ;;  %v2325_v33 = vunpack.i.l.bf16 %v2324_v52 }
 0x1a9   :  { %v2334_v49 = vpop.permute.xlu0 %2333 }
 0x1aa   :  { %v2336_v7 = vunpack.i.h.bf16 %v2334_v49  ;;  %v2335_v9 = vunpack.i.l.bf16 %v2334_v49 }
 0x1ac   :  { %v746_v0 = vsel %vm423_vm6, %v2335_v9, %v2336_v7 }
 0x1ad   :  { %v3093_v5 = vpop.permute.xlu0 %2343 }
 0x1ae   :  { %v2346_v17 = vunpack.i.h.bf16 %v3093_v5  ;;  %v2345_v15 = vunpack.i.l.bf16 %v3093_v5 }
 0x1af   :  { %v734_v6 = vpop.permute.xlu1 %733 }
 0x1b0   :  { %v750_v51 = vsel %vm423_vm6, %v2345_v15, %v2346_v17  ;;  %v749_v26 = vsel %vm423_vm6, %v2325_v33, %v2345_v15 }
 0x1b1   :  { %v3097_v10 = vpop.permute.xlu0 %735 }
 0x1b2   :  { %v758_v56 = vsel %vm423_vm6, %v734_v6, %v3097_v10 }
 0x1b3   :  { %v2329_v42 = vpop.permute.xlu1 %2328 }
 0x1b4   :  { %v2331_v44 = vunpack.i.h.bf16 %v2329_v42  ;;  %v2330_v32 = vunpack.i.l.bf16 %v2329_v42 }
 0x1b5   :  { %v2359_v50 = vpop.permute.xlu0 %2358 }
 0x1b6   :  { %v742_v37 = vsel %vm423_vm6, %v2330_v32, %v2331_v44  ;;  %v2361_v19 = vunpack.i.h.bf16 %v2359_v50  ;;  %v2360_v55 = vunpack.i.l.bf16 %v2359_v50 }
 0x1b7   :  { %v2339_v63 = vpop.permute.xlu1 %2338  ;;  %v2082_v27 = vpack.c.bf16 %v746_v0, %v742_v37 }
 0x1b8   :  { %v2341_v12 = vunpack.i.h.bf16 %v2339_v63  ;;  %v2340_v13 = vunpack.i.l.bf16 %v2339_v63  ;;  %v747_v60 = vsel %vm423_vm6, %v2336_v7, %v2360_v55  ;;  %v748_v46 = vsel %vm423_vm6, %v2360_v55, %v2361_v19  ;;  %v931_v55 = vld [vmem:[%s3633_s4] sm:$0xff] }
 0x1b9   :  { %2083 = vmatprep.subr.bf16.mxu1 %v2082_v27  ;;  %v2364_v14 = vpop.permute.xlu0 %2363 }
 0x1ba   :  { %v741_v34 = vsel %vm423_vm6, %v2340_v13, %v2330_v32  ;;  %v745_v36 = vsel %vm423_vm6, %v2341_v12, %v2335_v9  ;;  %v2366_v30 = vunpack.i.h.bf16 %v2364_v14  ;;  %v2365_v53 = vunpack.i.l.bf16 %v2364_v14 }
 0x1bb   :  { %v2349_v41 = vpop.permute.xlu1 %2348  ;;  %v2084_v43 = vpack.c.bf16 %v745_v36, %v741_v34 }
 0x1bc   :  { %v2351_v8 = vunpack.i.h.bf16 %v2349_v41  ;;  %v2350_v47 = vunpack.i.l.bf16 %v2349_v41  ;;  %v751_v3 = vsel %vm423_vm6, %v2346_v17, %v2365_v53  ;;  %v752_v49 = vsel %vm423_vm6, %v2365_v53, %v2366_v30 }
 0x1bd   :  { %2085 = vmatpush1.bf16.msra.mxu1 %v2084_v43  ;;  %v738_v42 = vpop.permute.xlu0 %737 }
 0x1be   :  { %v754_v1 = vsel %vm423_vm6, %v2350_v47, %v2351_v8  ;;  %v753_v31 = vsel %vm423_vm6, %v2326_v22, %v2350_v47  ;;  %v759_v32 = vsel %vm423_vm6, %v3097_v10, %v738_v42 }
 0x1bf   :  { %v732_v54 = vpop.permute.xlu1 %731  ;;  %v2086_v23 = vpack.c.bf16 %v754_v1, %v750_v51  ;;  %v2088_v2 = vpack.c.bf16 %v753_v31, %v749_v26 }
 0x1c0   :  { %v757_v58 = vsel %vm423_vm6, %v732_v54, %v734_v6 }
 0x1c1   :  { %2087 = vmatprep.subr.bf16.mxu1 %v2086_v23 }
 0x1c2   :  { %2089 = vmatpush1.bf16.msra.mxu1 %v2088_v2 }
 0x1c3   :  { %v2354_v20 = vpop.permute.xlu1 %2353  ;;  %1868 = vmatprep.subr.msk.mxu1 %vm645_vm8, %v758_v56 }
 0x1c4   :  { %v2356_v28 = vunpack.i.h.bf16 %v2354_v20  ;;  %v2355_v48 = vunpack.i.l.bf16 %v2354_v20  ;;  %v932_v20 = vld [vmem:[%s3634_s5] sm:$0xff] }
 0x1c6   :  { %v743_v18 = vsel %vm423_vm6, %v2331_v44, %v2355_v48  ;;  %1869 = vmatpush1.msk.msra.mxu1 %vm645_vm8, %v757_v58  ;;  %v744_v45 = vsel %vm423_vm6, %v2355_v48, %v2356_v28 }
 0x1c7   :  { %v2092_v59 = vpack.c.bf16 %v747_v60, %v743_v18  ;;  %v2369_v61 = vpop.permute.xlu1 %2368  ;;  %1870 = vmatmul.mubr.msk.f32.vlgmr.msra.gmra.mrb[0].mxu1 %vm777_vm14, %v65_v35  ;;  %v2090_v62 = vpack.c.bf16 %v748_v46, %v744_v45 }
 0x1c8   :  { %v2371_v39 = vunpack.i.h.bf16 %v2369_v61  ;;  %v2370_v25 = vunpack.i.l.bf16 %v2369_v61  ;;  %924 = vmatprep.mubr.f32.mxu1 %v2532_v57 }
 0x1c9   :  { %2091 = vmatprep.subr.bf16.mxu1 %v2090_v62 }
 0x1ca   :  { %v755_v52 = vsel %vm423_vm6, %v2351_v8, %v2370_v25  ;;  %2093 = vmatpush1.bf16.msra.mxu1 %v2092_v59  ;;  %v756_v6 = vsel %vm423_vm6, %v2370_v25, %v2371_v39 }
 0x1cb   :  { %v2096_v5 = vpack.c.bf16 %v755_v52, %v751_v3  ;;  %v740_v7 = vpop.permute.xlu1 %739  ;;  %v2094_v9 = vpack.c.bf16 %v756_v6, %v752_v49  ;;  %v994_v49 = vld [vmem:[%s3635_s6 + $0x80] sm:$0xff]  ;;  %v995_v6 = vld [vmem:[%s3635_s6 + $0x88] sm:$0xff] }
 0x1cc   :  { %v760_v44 = vsel %vm423_vm6, %v738_v42, %v740_v7  ;;  %v2098_v7 = vpack.c.bf16 %v995_v6, %v994_v49  ;;  %v978_v42 = vld [vmem:[%s3635_s6] sm:$0xff]  ;;  %v1003_v6 = vld [vmem:[%s3635_s6 + $0xc8] sm:$0xff]  ;;  %vm1663_vm6 = vcmask 261120  }
 0x1cd   :  { %2095 = vmatprep.subr.bf16.mxu1 %v2094_v9  ;;  %v1027_v9 = vld [vmem:[%s3635_s6 + $0x188] sm:$0xff]  ;;  %v1002_v49 = vld [vmem:[%s3635_s6 + $0xc0] sm:$0xff] }
 0x1ce   :  { %2097 = vmatpush1.bf16.msra.mxu1 %v2096_v5  ;;  %v669_v63 = vpop.permute.xlu0 %668  ;;  %v1026_v5 = vld [vmem:[%s3635_s6 + $0x180] sm:$0xff]  ;;  %2099 = vmatprep.subr.bf16.mxu0 %v2098_v7  ;;  %v1035_v7 = vld [vmem:[%s3635_s6 + $0x1c8] sm:$0xff] }
 0x1cf   :  { %1871 = vmatprep.subr.msk.mxu1 %vm645_vm8, %v760_v44  ;;  %v979_v44 = vld [vmem:[%s3635_s6 + $0x8] sm:$0xff] }
 0x1d2   :  { %1872 = vmatpush1.msk.msra.mxu1 %vm645_vm8, %v759_v32  ;;  %v2130_v32 = vpack.c.bf16 %v1027_v9, %v1026_v5  ;;  %v1034_v5 = vld [vmem:[%s3635_s6 + $0x1c0] sm:$0xff]  ;;  %vm1667_vm8 = vcmask 523264  }
 0x1d3   :  { %1873 = vmatmul.mubr.msk.f32.vlgmr.msra.gmra.mrb[2].mxu1 %vm777_vm14, %v65_v35 }
 0x1d4   :  { %2131 = vmatprep.subr.bf16.mxu1 %v2130_v32  ;;  %v986_v32 = vld [vmem:[%s3635_s6 + $0x40] sm:$0xff] }
 0x29a   :  { %v855_v37 = vpop.f32.mrb[0].mxu1 }
 0x29b   :  { %v857_v0 = vpop.f32.mrb[1].mxu1  ;;  %v856_v27 = vadd.f32 %v855_v37, %v669_v63  ;;  %v2100_v37 = vpack.c.bf16 %v979_v44, %v978_v42  ;;  %v2114_v44 = vpack.c.bf16 %v1003_v6, %v1002_v49  ;;  %v993_v49 = vld [vmem:[%s3635_s6 + $0x78] sm:$0xff] }
 0x29c   :  { %v858_v12 = vadd.f32 %v857_v0, %v669_v63  ;;  %v1010_v0 = vld [vmem:[%s3635_s6 + $0x100] sm:$0xff] }
 0x29d   :  { %v938_v17 = vmul.f32 %v856_v27, %v856_v27  ;;  %2101 = vmatpush3.bf16.msra.mxu0 %v2100_v37  ;;  %v987_v37 = vld [vmem:[%s3635_s6 + $0x48] sm:$0xff] }
 0x29e   :  { %v939_v13 = vmul.f32 %v858_v12, %v858_v12  ;;  %v933_v34 = vadd.f32 %v858_v12, %v856_v27 }
 0x2a0   :  { %v942_v8 = vadd.f32 %v939_v13, %v938_v17  ;;  %v997_v13 = vld [vmem:[%s3635_s6 + $0x98] sm:$0xff]  ;;  %v1028_v17 = vld [vmem:[%s3635_s6 + $0x190] sm:$0xff] }
 0x2a6   :  { %v926_v15 = vpop.f32.mrb[2].mxu1 }
 0x2a7   :  { %v927_v36 = vadd.f32 %v926_v15, %v669_v63  ;;  %v928_v41 = vpop.f32.mrb[3].mxu1  ;;  %v1029_v15 = vld [vmem:[%s3635_s6 + $0x198] sm:$0xff] }
 0x2a8   :  { %v929_v43 = vadd.f32 %v928_v41, %v669_v63  ;;  %v1011_v63 = vld [vmem:[%s3635_s6 + $0x108] sm:$0xff]  ;;  %v2134_v41 = vpack.c.bf16 %v1029_v15, %v1028_v17  ;;  %v1036_v17 = vld [vmem:[%s3635_s6 + $0x1d0] sm:$0xff]  ;;  %v1037_v15 = vld [vmem:[%s3635_s6 + $0x1d8] sm:$0xff] }
 0x2a9   :  { %v940_v22 = vmul.f32 %v927_v36, %v927_v36  ;;  %v934_v33 = vadd.f32 %v933_v34, %v927_v36 }
 0x2aa   :  { %v941_v10 = vmul.f32 %v929_v43, %v929_v43 }
 0x2ab   :  { %v935_v47 = vadd.f32 %v934_v33, %v929_v43  ;;  %v943_v50 = vadd.f32 %v942_v8, %v940_v22  ;;  %v981_v22 = vld [vmem:[%s3635_s6 + $0x18] sm:$0xff]  ;;  %v1012_v33 = vld [vmem:[%s3635_s6 + $0x110] sm:$0xff] }
 0x2ad   :  { %936 = vadd.xlane.f32.xlu1 %v935_v47  ;;  %v944_v51 = vadd.f32 %v943_v50, %v941_v10  ;;  %v1013_v10 = vld [vmem:[%s3635_s6 + $0x118] sm:$0xff]  ;;  %v998_v47 = vld [vmem:[%s3635_s6 + $0xa0] sm:$0xff]  ;;  %v999_v50 = vld [vmem:[%s3635_s6 + $0xa8] sm:$0xff] }
 0x2af   :  { %945 = vadd.xlane.f32.xlu0 %v944_v51  ;;  %v2136_v51 = vpack.c.bf16 %v1013_v10, %v1012_v33  ;;  %v1020_v33 = vld [vmem:[%s3635_s6 + $0x150] sm:$0xff]  ;;  %v1021_v10 = vld [vmem:[%s3635_s6 + $0x158] sm:$0xff] }
 0x33a   :  { %v937_v1 = vpop.xlane.xlu1 %936 }
 0x33b   :  { %v947_v26 = vmul.f32 0.001953125, %v937_v1  ;;  %v2106_v1 = vpack.c.bf16 %v999_v50, %v998_v47  ;;  %v1006_v47 = vld [vmem:[%s3635_s6 + $0xe0] sm:$0xff]  ;;  %v1007_v50 = vld [vmem:[%s3635_s6 + $0xe8] sm:$0xff] }
 0x33c   :  { %v946_v31 = vpop.xlane.xlu0 %945 }
 0x33d   :  { %v949_v54 = vmul.f32 %v947_v26, %v947_v26  ;;  %v948_v23 = vmul.f32 0.001953125, %v946_v31  ;;  %v1031_v31 = vld [vmem:[%s3635_s6 + $0x1a8] sm:$0xff] }
 0x33f   :  { %v950_v2 = vsub.f32 %v948_v23, %v949_v54  ;;  %v982_v54 = vld [vmem:[%s3635_s6 + $0x20] sm:$0xff] }
 0x341   :  { %v951_v19 = vadd.f32 1e-05, %v950_v2  ;;  %v983_v2 = vld [vmem:[%s3635_s6 + $0x28] sm:$0xff] }
 0x343   :  { %2461 = vrsqrt.f32 %v951_v19  ;;  %v1014_v19 = vld [vmem:[%s3635_s6 + $0x120] sm:$0xff] }
 0x34d   :  { %v2462_v56 = vpop.eup %2461 }
 0x34e   :  { %v953_v14 = vmul.f32 %v2462_v56, %v931_v55  ;;  %v1015_v55 = vld [vmem:[%s3635_s6 + $0x128] sm:$0xff]  ;;  %v2108_v56 = vpack.c.bf16 %v983_v2, %v982_v54  ;;  %v2122_v54 = vpack.c.bf16 %v1007_v50, %v1006_v47 }
 0x34f   :  { %v991_v2 = vld [vmem:[%s3635_s6 + $0x68] sm:$0xff] }
 0x350   :  { %956 = vperm.xlu1 %2373, %v953_v14   ;;  %v963_v28 = vmul.f32 %v953_v14, %v947_v26  ;;  %v1030_v26 = vld [vmem:[%s3635_s6 + $0x1a0] sm:$0xff]  ;;  %v1000_v14 = vld [vmem:[%s3635_s6 + $0xb0] sm:$0xff] }
 0x351   :  { %v2138_v23 = vpack.c.bf16 %v1031_v31, %v1030_v26  ;;  %v2152_v31 = vpack.c.bf16 %v1021_v10, %v1020_v33 }
 0x352   :  { %v964_v48 = vsub.f32 %v932_v20, %v963_v28  ;;  %v1001_v20 = vld [vmem:[%s3635_s6 + $0xb8] sm:$0xff]  ;;  %v1032_v28 = vld [vmem:[%s3635_s6 + $0x1b0] sm:$0xff] }
 0x354   :  { %967 = vperm.xlu0 %2372, %v964_v48   ;;  %v2140_v48 = vpack.c.bf16 %v1015_v55, %v1014_v19  ;;  %v1022_v55 = vld [vmem:[%s3635_s6 + $0x160] sm:$0xff] }
 0x3cf   :  { %v957_v35 = vpop.permute.xlu1 %956 }
 0x3d0   :  { %v959_v60 = vmul.f32 %v957_v35, %v856_v27  ;;  %v960_v58 = vmul.f32 %v957_v35, %v858_v12  ;;  %v961_v46 = vmul.f32 %v957_v35, %v927_v36  ;;  %v962_v30 = vmul.f32 %v957_v35, %v929_v43  ;;  %v996_v27 = vld [vmem:[%s3635_s6 + $0x90] sm:$0xff] }
 0x3d1   :  { %v2132_v12 = vpack.c.bf16 %v1011_v63, %v1010_v0  ;;  %v2102_v36 = vpack.c.bf16 %v997_v13, %v996_v27  ;;  %v980_v43 = vld [vmem:[%s3635_s6 + $0x10] sm:$0xff]  ;;  %v2110_v35 = vpack.c.bf16 %v1001_v20, %v1000_v14  ;;  %v1018_v0 = vld [vmem:[%s3635_s6 + $0x140] sm:$0xff]  ;;  %v2146_v63 = vpack.c.bf16 %v1035_v7, %v1034_v5  ;;  %v1019_v27 = vld [vmem:[%s3635_s6 + $0x148] sm:$0xff] }
 0x3d2   :  { %v2104_v8 = vpack.c.bf16 %v981_v22, %v980_v43  ;;  %v1005_v13 = vld [vmem:[%s3635_s6 + $0xd8] sm:$0xff]  ;;  %v988_v43 = vld [vmem:[%s3635_s6 + $0x50] sm:$0xff] }
 0x3d3   :  { %v968_v53 = vpop.permute.xlu0 %967  ;;  %2133 = vmatpush3.bf16.msra.mxu1 %v2132_v12  ;;  %2103 = vmatprep.subr.bf16.mxu0 %v2102_v36  ;;  %v1004_v12 = vld [vmem:[%s3635_s6 + $0xd0] sm:$0xff]  ;;  %v2148_v36 = vpack.c.bf16 %v1019_v27, %v1018_v0  ;;  %v989_v22 = vld [vmem:[%s3635_s6 + $0x58] sm:$0xff] }
 0x3d4   :  { %v3137_v18 = vadd.f32 %v968_v53, %v959_v60  ;;  %v3139_v45 = vadd.f32 %v968_v53, %v960_v58  ;;  %v3141_v59 = vadd.f32 %v968_v53, %v961_v46  ;;  %v3143_v61 = vadd.f32 %v968_v53, %v962_v30  ;;  %2135 = vmatprep.subr.bf16.mxu1 %v2134_v41  ;;  %v1033_v60 = vld [vmem:[%s3635_s6 + $0x1b8] sm:$0xff]  ;;  %v984_v58 = vld [vmem:[%s3635_s6 + $0x30] sm:$0xff] }
 0x3d5   :  { %2105 = vmatpush3.bf16.msra.mxu0 %v2104_v8  ;;  %v985_v46 = vld [vmem:[%s3635_s6 + $0x38] sm:$0xff]  ;;  %v2142_v30 = vpack.c.bf16 %v1033_v60, %v1032_v28  ;;  %v1016_v53 = vld [vmem:[%s3635_s6 + $0x130] sm:$0xff]  ;;  %v2118_v41 = vpack.c.bf16 %v1005_v13, %v1004_v12  ;;  %v2150_v8 = vpack.c.bf16 %v1037_v15, %v1036_v17  ;;  %v2120_v26 = vpack.c.bf16 %v989_v22, %v988_v43 }
 0x3d6   :  { %v974_v62 = vmax.f32 %v3137_v18, 0.0  ;;  %v975_v39 = vmax.f32 %v3139_v45, 0.0  ;;  %v976_v3 = vmax.f32 %v3141_v59, 0.0  ;;  %v977_v52 = vmax.f32 %v3143_v61, 0.0  ;;  %2107 = vmatprep.subr.bf16.mxu0 %v2106_v1  ;;  %v1039_v1 = vld [vmem:[%s3635_s6 + $0x1e8] sm:$0xff]  ;;  %v1040_v60 = vld [vmem:[%s3635_s6 + $0x1f0] sm:$0xff] }
 0x3d7   :  { %2137 = vmatpush3.bf16.msra.mxu1 %v2136_v51  ;;  %v2112_v9 = vpack.c.bf16 %v985_v46, %v984_v58  ;;  %v1038_v51 = vld [vmem:[%s3635_s6 + $0x1e0] sm:$0xff]  ;;  %v1024_v7 = vld [vmem:[%s3635_s6 + $0x170] sm:$0xff] }
 0x3d8   :  { %v2374_v25 = vpack.i.bf16 %v975_v39, %v974_v62  ;;  %v2379_v34 = vpack.i.bf16 %v977_v52, %v976_v3  ;;  %2139 = vmatprep.subr.bf16.mxu1 %v2138_v23  ;;  %v990_v23 = vld [vmem:[%s3635_s6 + $0x60] sm:$0xff]  ;;  %v2154_v19 = vpack.c.bf16 %v1039_v1, %v1038_v51 }
 0x3d9   :  { %2109 = vmatpush3.bf16.msra.mxu0 %v2108_v56  ;;  %v1023_v56 = vld [vmem:[%s3635_s6 + $0x168] sm:$0xff]  ;;  %v2124_v14 = vpack.c.bf16 %v991_v2, %v990_v23 }
 0x3da   :  { %2375 = vrot.lane.b32.xlu1 %v2374_v25, %s2520_s3  ;;  %v1017_v25 = vld [vmem:[%s3635_s6 + $0x138] sm:$0xff]  ;;  %2111 = vmatprep.subr.bf16.mxu0 %v2110_v35  ;;  %v2156_v20 = vpack.c.bf16 %v1023_v56, %v1022_v55 }
 0x3db   :  { %2141 = vmatpush3.bf16.msra.mxu1 %v2140_v48  ;;  %v2144_v42 = vpack.c.bf16 %v1017_v25, %v1016_v53  ;;  %v1008_v48 = vld [vmem:[%s3635_s6 + $0xf0] sm:$0xff]  ;;  %v1009_v35 = vld [vmem:[%s3635_s6 + $0xf8] sm:$0xff] }
 0x3dc   :  { %2143 = vmatprep.subr.bf16.mxu1 %v2142_v30  ;;  %v2126_v30 = vpack.c.bf16 %v1009_v35, %v1008_v48  ;;  %v1041_v53 = vld [vmem:[%s3635_s6 + $0x1f8] sm:$0xff]  ;;  %v992_v25 = vld [vmem:[%s3635_s6 + $0x70] sm:$0xff] }
 0x3dd   :  { %2113 = vmatpush3.bf16.msra.mxu0 %v2112_v9  ;;  %v2158_v6 = vpack.c.bf16 %v1041_v53, %v1040_v60  ;;  %v2128_v5 = vpack.c.bf16 %v993_v49, %v992_v25  ;;  %v1025_v9 = vld [vmem:[%s3635_s6 + $0x178] sm:$0xff] }
 0x3de   :  { %2380 = vrot.lane.b32.xlu1 %v2379_v34, %s2520_s3  ;;  %v2116_v34 = vpack.c.bf16 %v987_v37, %v986_v32  ;;  %2115 = vmatprep.subr.bf16.mxu0 %v2114_v44 }
 0x3df   :  { %2145 = vmatpush3.bf16.msra.mxu1 %v2144_v42  ;;  %v2160_v42 = vpack.c.bf16 %v1025_v9, %v1024_v7 }
 0x3e0   :  { %2147 = vmatprep.subr.bf16.mxu1 %v2146_v63 }
 0x3e1   :  { %2117 = vmatpush3.bf16.msra.mxu0 %v2116_v34 }
 0x3e2   :  { %2119 = vmatprep.subr.bf16.mxu0 %v2118_v41 }
 0x3e3   :  { %2149 = vmatpush3.bf16.msra.mxu1 %v2148_v36  ;;  %v3366_v36 = vld [vmem:[%s3638_s9] sm:$0xff] }
 0x3e4   :  { %2151 = vmatprep.subr.bf16.mxu1 %v2150_v8  ;;  %v1259_v59 = vrot.slane %v3366_v36, %v2700_v16  ;;  %v1249_v18 = vrot.slane %v3366_v36, %v2662_v4  ;;  %v1284_v45 = vrot.slane %v3366_v36, %v2713_v21  ;;  %v1269_v61 = vrot.slane %v3366_v36, %v2685_v11  ;;  %v1874_v11 = vld [vmem:[%s3638_s9 + $0x8] ss:$0 sm:$0xff]  ;;  %s2540_s9 = smov 118  }
 0x3e5   :  { %2121 = vmatpush3.bf16.msra.mxu0 %v2120_v26  ;;  %v1304_v16 = vrot.slane %v3366_v36, %v2720_v24  ;;  %v1294_v4 = vrot.slane %v3366_v36, %v2735_v29  ;;  %v1239_v21 = vrot.slane %v3366_v36, %v2770_v40 }
 0x3e6   :  { %2123 = vmatprep.subr.bf16.mxu0 %v2122_v54 }
 0x3e7   :  { %2153 = vmatpush3.bf16.msra.mxu1 %v2152_v31 }
 0x3e8   :  { %2155 = vmatprep.subr.bf16.mxu1 %v2154_v19 }
 0x3e9   :  { %2125 = vmatpush3.bf16.msra.mxu0 %v2124_v14 }
 0x3ea   :  { %2127 = vmatprep.subr.bf16.mxu0 %v2126_v30 }
 0x3eb   :  { %2157 = vmatpush3.bf16.msra.mxu1 %v2156_v20 }
 0x3ec   :  { %2159 = vmatprep.subr.bf16.mxu1 %v2158_v6 }
 0x3ed   :  { %2129 = vmatpush3.bf16.msra.mxu0 %v2128_v5 }
 0x3ef   :  { %2161 = vmatpush3.bf16.msra.mxu1 %v2160_v42 }
 0x44c   :  { %v2376_v28 = vpop.permute.xlu1 %2375 }
 0x44d   :  { %v2378_v58 = vunpack.i.h.bf16 %v2376_v28  ;;  %v2377_v46 = vunpack.i.l.bf16 %v2376_v28 }
 0x44f   :  { %v1054_v32 = vsel %vm235_vm3, %v2377_v46, %v2378_v58 }
 0x450   :  { %v2381_v44 = vpop.permute.xlu1 %2380  ;;  %v1063_v15 = vmax.f32 %v974_v62, %v1054_v32  ;;  %v1279_v32 = vrot.slane %v3366_v36, %v2762_v38  ;;  %v2541_v36 = vmov 0.0|0.0  }
 0x451   :  { %v2383_v37 = vunpack.i.h.bf16 %v2381_v44  ;;  %v2382_v0 = vunpack.i.l.bf16 %v2381_v44  ;;  %2162 = vmatprep.subr.bf16.mxu0 %v2541_v36  ;;  %2174 = vmatprep.subr.bf16.mxu1 %v2541_v36 }
 0x453   :  { %v1055_v63 = vsel %vm235_vm3, %v2378_v58, %v2382_v0  ;;  %v1056_v27 = vsel %vm235_vm3, %v2382_v0, %v2383_v37  ;;  %v1062_v12 = vsel %vm235_vm3, %v2383_v37, %v2377_v46 }
 0x454   :  { %v1065_v13 = vmax.f32 %v976_v3, %v1056_v27  ;;  %v1066_v17 = vmax.f32 %v977_v52, %v1062_v12  ;;  %v1064_v34 = vmax.f32 %v975_v39, %v1055_v63 }
 0x456   :  { %v2389_v41 = vpack.i.bf16 %v1066_v17, %v1065_v13  ;;  %v2384_v43 = vpack.i.bf16 %v1064_v34, %v1063_v15 }
 0x458   :  { %2390 = vrot.lane.b32.xlu1 %v2389_v41, %s2519_s25  ;;  %2385 = vrot.lane.b32.xlu0 %v2384_v43, %s2519_s25 }
 0x45c   :  { %1261 = vrot.lane.b32.xlu1 %v1259_v59, %s2534_s21  ;;  %1251 = vrot.lane.b32.xlu0 %v1249_v18, %s2535_s2  ;;  %s2545_s21 = smov 64  }
 0x460   :  { %1286 = vrot.lane.b32.xlu1 %v1284_v45, %s2522_s27  ;;  %1271 = vrot.lane.b32.xlu0 %v1269_v61, %s2520_s3  ;;  %s2538_s27 = smov 119  }
 0x464   :  { %1306 = vrot.lane.b32.xlu1 %v1304_v16, %s2536_s26  ;;  %1296 = vrot.lane.b32.xlu0 %v1294_v4, %s2537_s0  ;;  %s3666_s26 = smov 96  }
 0x468   :  { %1241 = vrot.lane.b32.xlu1 %v1239_v21, %s2538_s27  ;;  %1316 = vrot.lane.b32.xlu0 %v1874_v11, %s2539_s23 }
 0x4ca   :  { %v2391_v24 = vpop.permute.xlu1 %2390  ;;  %v2386_v62 = vpop.permute.xlu0 %2385 }
 0x4cb   :  { %v2393_v29 = vunpack.i.h.bf16 %v2391_v24  ;;  %v2392_v39 = vunpack.i.l.bf16 %v2391_v24  ;;  %v2388_v3 = vunpack.i.h.bf16 %v2386_v62  ;;  %v2387_v52 = vunpack.i.l.bf16 %v2386_v62 }
 0x4cd   :  { %v1081_v22 = vsel %vm151_vm1, %v2392_v39, %v2393_v29  ;;  %v1080_v40 = vsel %vm151_vm1, %v2388_v3, %v2392_v39  ;;  %v1087_v33 = vsel %vm151_vm1, %v2393_v29, %v2387_v52  ;;  %v1079_v8 = vsel %vm151_vm1, %v2387_v52, %v2388_v3 }
 0x4ce   :  { %v1090_v10 = vmax.f32 %v1065_v13, %v1081_v22  ;;  %v1089_v47 = vmax.f32 %v1064_v34, %v1080_v40  ;;  %v1091_v50 = vmax.f32 %v1066_v17, %v1087_v33  ;;  %v1088_v51 = vmax.f32 %v1063_v15, %v1079_v8  ;;  %v1252_v1 = vpop.permute.xlu0 %1251  ;;  %v1262_v26 = vpop.permute.xlu1 %1261 }
 0x4cf   :  { %v1264_v56 = vmul.f32 0.0, %v1262_v26  ;;  %v1254_v14 = vmul.f32 0.0, %v1252_v1 }
 0x4d0   :  { %1156 = vmatprep.mubr.f32.mxu0 %v1089_v47  ;;  %1226 = vmatprep.mubr.f32.mxu1 %v1091_v50 }
 0x4d1   :  { %1157 = vmatmul.mubr.f32.vlgmr.msra.gmra.mrb[0].mxu0 %v1088_v51  ;;  %1227 = vmatmul.mubr.f32.vlgmr.msra.gmra.mrb[4].mxu1 %v1090_v10 }
 0x4d2   :  { %v1272_v20 = vpop.permute.xlu0 %1271  ;;  %v1287_v48 = vpop.permute.xlu1 %1286  ;;  %2009 = vmatprep.mubr.msk.f32.mxu0 %vm2542_vm2, %v2532_v57  ;;  %2044 = vmatprep.mubr.msk.f32.mxu1 %vm2542_vm2, %v2532_v57 }
 0x4d3   :  { %v1290_v58 = vmul.f32 0.0, %v1287_v48  ;;  %v1274_v46 = vmul.f32 0.0, %v1272_v20 }
 0x4d6   :  { %v1297_v6 = vpop.permute.xlu0 %1296  ;;  %v1307_v5 = vpop.permute.xlu1 %1306 }
 0x4d7   :  { %v1300_v7 = vmul.f32 0.0, %v1297_v6  ;;  %v1310_v37 = vmul.f32 0.0, %v1307_v5 }
 0x4da   :  { %v1242_v12 = vpop.permute.xlu1 %1241  ;;  %v1317_v13 = vpop.permute.xlu0 %1316 }
 0x4db   :  { %v1244_v17 = vmul.f32 0.0, %v1242_v12  ;;  %v1320_v43 = vmul.f32 0.0, %v1317_v13 }
 0x5a4   :  { %v1909_v31 = vpop.f32.mrb[0].mxu0  ;;  %v1944_v54 = vpop.f32.mrb[4].mxu1 }
 0x5a5   :  { %v1910_v23 = vpop.f32.mrb[1].mxu0  ;;  %v1945_v2 = vpop.f32.mrb[5].mxu1 }
 0x5a6   :  { %v1911_v19 = vadd.f32 %v1910_v23, %v1909_v31  ;;  %v1946_v55 = vadd.f32 %v1945_v2, %v1944_v54 }
 0x5a8   :  { %v1229_v28 = vadd.f32 %v1946_v55, %v1911_v19 }
 0x5aa   :  { %v1265_v35 = vmul.f32 %v1262_v26, %v1229_v28  ;;  %v1255_v60 = vmul.f32 %v1252_v1, %v1229_v28  ;;  %v1289_v25 = vmul.f32 %v1287_v48, %v1229_v28  ;;  %v1275_v49 = vmul.f32 %v1272_v20, %v1229_v28  ;;  %v1233_v48 = vld [vmem:[%s3637_s8] sm:$0xff] }
 0x5ab   :  { %v1299_v44 = vmul.f32 %v1297_v6, %v1229_v28  ;;  %v1280_v63 = vmul.f32 %v1279_v32, %v1229_v28  ;;  %v1309_v27 = vmul.f32 %v1307_v5, %v1229_v28  ;;  %v1245_v15 = vmul.f32 %v1242_v12, %v1229_v28 }
 0x5ac   :  { %v2399_v30 = vpack.i.bf16 %v1265_v35, %v1264_v56  ;;  %v2394_v53 = vpack.i.bf16 %v1255_v60, %v1254_v14  ;;  %v2409_v9 = vpack.i.bf16 %v1290_v58, %v1289_v25  ;;  %v2404_v42 = vpack.i.bf16 %v1275_v49, %v1274_v46 }
 0x5ad   :  { %v2414_v0 = vpack.i.bf16 %v1300_v7, %v1299_v44  ;;  %v1319_v34 = vmul.f32 %v1317_v13, %v1229_v28  ;;  %v2419_v41 = vpack.i.bf16 %v1310_v37, %v1309_v27  ;;  %v2424_v38 = vpack.i.bf16 %v1245_v15, %v1244_v17 }
 0x5ae   :  { %2400 = vrot.lane.b32.xlu1 %v2399_v30, %s2527_s29  ;;  %2395 = vrot.lane.b32.xlu0 %v2394_v53, %s2520_s3  ;;  %s3664_s29 = smov 111  }
 0x5b2   :  { %2410 = vrot.lane.b32.xlu1 %v2409_v9, %s2540_s9  ;;  %2405 = vrot.lane.b32.xlu0 %v2404_v42, %s2535_s2 }
 0x5b6   :  { %2415 = vrot.lane.b32.xlu1 %v2414_v0, %s2519_s25  ;;  %1344 = vrot.lane.b32.xlu0 %v1280_v63, %s2538_s27 }
 0x5ba   :  { %1370 = vrot.lane.b32.xlu1 %v1319_v34, %s2529_s24  ;;  %2420 = vrot.lane.b32.xlu0 %v2419_v41, %s3664_s29 }
 0x5be   :  { %1372 = vrot.lane.b32.xlu0 %v1320_v43, %s2529_s24  ;;  %2425 = vrot.lane.b32.xlu1 %v2424_v38, %s2539_s23 }
 0x620   :  { %v2401_v59 = vpop.permute.xlu1 %2400  ;;  %v2396_v18 = vpop.permute.xlu0 %2395 }
 0x621   :  { %v2403_v45 = vunpack.i.h.bf16 %v2401_v59  ;;  %v2402_v61 = vunpack.i.l.bf16 %v2401_v59  ;;  %v2398_v16 = vunpack.i.h.bf16 %v2396_v18  ;;  %v2397_v4 = vunpack.i.l.bf16 %v2396_v18 }
 0x623   :  { %v1334_v21 = vsel %vm481_vm7, %v2402_v61, %v2403_v45  ;;  %v1327_v11 = vsel %vm235_vm3, %v2397_v4, %v2398_v16  ;;  %vm1416_vm3 = vcmask 72704   ;;  %vm1665_vm7 = vcmask 392192  }
 0x624   :  { %v2434_v24 = vpack.i.bf16 %v2403_v45, %v1334_v21  ;;  %v2429_v62 = vpack.i.bf16 %v2398_v16, %v1327_v11  ;;  %v2411_v29 = vpop.permute.xlu1 %2410  ;;  %v2406_v39 = vpop.permute.xlu0 %2405 }
 0x625   :  { %v2413_v3 = vunpack.i.h.bf16 %v2411_v29  ;;  %v2412_v52 = vunpack.i.l.bf16 %v2411_v29  ;;  %v2408_v22 = vunpack.i.h.bf16 %v2406_v39  ;;  %v2407_v40 = vunpack.i.l.bf16 %v2406_v39 }
 0x626   :  { %2430 = vrot.lane.b32.xlu0 %v2429_v62, %s2539_s23  ;;  %2435 = vrot.lane.b32.xlu1 %v2434_v24, %s2539_s23  ;;  %v1232_v24 = vld [vmem:[%s3636_s7] sm:$0xff]  ;;  %s2544_s7 = smov 48  }
 0x627   :  { %v1353_v33 = vsel %vm1352_vm15, %v2412_v52, %v2413_v3  ;;  %v1342_v8 = vsel %vm1341_vm0, %v2407_v40, %v2408_v22 }
 0x628   :  { %v2449_v10 = vpack.i.bf16 %v1353_v33, %v2412_v52  ;;  %v2439_v47 = vpack.i.bf16 %v2408_v22, %v1342_v8  ;;  %v2416_v50 = vpop.permute.xlu1 %2415  ;;  %v1345_v51 = vpop.permute.xlu0 %1344 }
 0x629   :  { %v2417_v1 = vunpack.i.l.bf16 %v2416_v50  ;;  %v2418_v26 = vunpack.i.h.bf16 %v2416_v50 }
 0x62a   :  { %2440 = vrot.lane.b32.xlu0 %v2439_v47, %s2539_s23  ;;  %2450 = vrot.lane.b32.xlu1 %v2449_v10, %s2539_s23 }
 0x62b   :  { %v2444_v31 = vpack.i.bf16 %v2417_v1, %v1345_v51  ;;  %v1360_v19 = vsel %vm151_vm1, %v2417_v1, %v2418_v26  ;;  %v1508_v1 = vld [vmem:[%s3639_s10] sm:$0xff]  ;;  %s2547_s10 = smov [#allocation2]  }
 0x62c   :  { %v2421_v54 = vpop.permute.xlu0 %2420  ;;  %v1371_v20 = vpop.permute.xlu1 %1370  ;;  %s1842_s28 = sshll.u32 %s2547_s10, 4  ;;  %s1843_s28 = int_to_ptr.vmem [resolvable:$true] %s1842_s28 }
 0x62d   :  { %v2423_v23 = vunpack.i.h.bf16 %v2421_v54  ;;  %v2422_v2 = vunpack.i.l.bf16 %v2421_v54  ;;  %s2471_s27 = scalar_lea.vmem %s1843_s28, 32  ;;  %p2476_p1 = scmp.lt.s32.totalorder %s1843_s28, %s1843_s28 }
 0x62e   :  { %2445 = vrot.lane.b32.xlu0 %v2444_v31, %s2539_s23  ;;  %v1509_v31 = vld [vmem:[%s3640_s11] sm:$0xff]  ;;  %s3665_s11 = smov 16   ;;  %p2472_p0 = scmp.ne.s32.totalorder %s1843_s28, %s2471_s27 }
 0x62f   :  { %v2454_v55 = vpack.i.bf16 %v2422_v2, %v1360_v19  ;;  %v1367_v56 = vsel %vm109_vm10, %v2422_v2, %v2423_v23  ;;  %v1537_v2 = vld [vmem:[%s3641_s12] sm:$0xff]  ;;  %v1538_v19 = vld [vmem:[%s3641_s12 + $0x8] sm:$0xff]  ;;  %vm1705_vm10 = vcmask 1040384   ;;  %p2477_p2 = scmp.lt.s32.totalorder %s2471_s27, %s2471_s27 }
 0x630   :  { %v1373_v14 = vpop.permute.xlu0 %1372  ;;  %v2426_v35 = vpop.permute.xlu1 %2425 }
 0x631   :  { %2455 = vrot.lane.b32.xlu1 %v2454_v55, %s2539_s23  ;;  %v1374_v28 = vsel %vm560_vm9, %v1371_v20, %v1373_v14  ;;  %v2428_v60 = vunpack.i.h.bf16 %v2426_v35  ;;  %v2427_v58 = vunpack.i.l.bf16 %v2426_v35  ;;  %v1539_v55 = vld [vmem:[%s3641_s12 + $0x10] sm:$0xff]  ;;  %v1540_v14 = vld [vmem:[%s3641_s12 + $0x18] sm:$0xff]  ;;  %v1542_v35 = vld [vmem:[%s3641_s12 + $0x28] sm:$0xff]  ;;  %vm1669_vm9 = vcmask 654336   ;;  %p2478_p3 = por %p2477_p2, %p2476_p1 }
 0x632   :  { %1410 = vrot.lane.b32.xlu0 %v1367_v56, %s2539_s23  ;;  %v2175_v56 = vpack.c.bf16 %v1538_v19, %v1537_v2 }
 0x633   :  { %v1417_v49 = vsel %vm1416_vm3, %v2427_v58, %v2428_v60  ;;  %p2479_p4 = pnand %p2478_p3, %p2472_p0 }
 0x634   :  { %2176 = vmatpush3.bf16.msra.mxu1 %v2175_v56 }
 0x635   :  { %1412 = vrot.lane.b32.xlu1 %v1371_v20, %s2539_s23  ;;  %2177 = vmatprep.subr.bf16.mxu1 %v2541_v36 }
 0x636   :  { %1414 = vrot.lane.b32.xlu0 %v1374_v28, %s2539_s23  ;;  %v2178_v28 = vpack.c.bf16 %v1540_v14, %v1539_v55 }
 0x638   :  { %2179 = vmatpush3.bf16.msra.mxu1 %v2178_v28 }
 0x639   :  { %1377 = vperm.xlu1 %2373, %v1233_v48   ;;  %v1541_v48 = vld [vmem:[%s3641_s12 + $0x20] sm:$0xff]  ;;  %2180 = vmatprep.subr.bf16.mxu1 %v2541_v36 }
 0x698   :  { %v2431_v46 = vpop.permute.xlu0 %2430  ;;  %v2436_v30 = vpop.permute.xlu1 %2435 }
 0x699   :  { %v2433_v53 = vunpack.i.h.bf16 %v2431_v46  ;;  %v2432_v25 = vunpack.i.l.bf16 %v2431_v46  ;;  %v2438_v5 = vunpack.i.h.bf16 %v2436_v30  ;;  %v2437_v7 = vunpack.i.l.bf16 %v2436_v30 }
 0x69a   :  { %v2181_v30 = vpack.c.bf16 %v1542_v35, %v1541_v48 }
 0x69b   :  { %v1418_v6 = vsel %vm1416_vm3, %v2432_v25, %v2433_v53  ;;  %v1419_v27 = vsel %vm1416_vm3, %v2437_v7, %v2438_v5  ;;  %v1543_v53 = vld [vmem:[%s3641_s12 + $0x30] sm:$0xff]  ;;  %v1544_v25 = vld [vmem:[%s3641_s12 + $0x38] sm:$0xff]  ;;  %v1545_v5 = vld [vmem:[%s3641_s12 + $0x40] sm:$0xff] }
 0x69c   :  { %v2163_v9 = vpack.c.bf16 %v1418_v6, %v1417_v49  ;;  %v2441_v42 = vpop.permute.xlu0 %2440  ;;  %v2451_v44 = vpop.permute.xlu1 %2450  ;;  %2182 = vmatpush3.bf16.msra.mxu1 %v2181_v30  ;;  %v2184_v6 = vpack.c.bf16 %v1544_v25, %v1543_v53  ;;  %v1546_v7 = vld [vmem:[%s3641_s12 + $0x48] sm:$0xff] }
 0x69d   :  { %v2443_v32 = vunpack.i.h.bf16 %v2441_v42  ;;  %v2442_v37 = vunpack.i.l.bf16 %v2441_v42  ;;  %v2453_v0 = vunpack.i.h.bf16 %v2451_v44  ;;  %v2452_v63 = vunpack.i.l.bf16 %v2451_v44  ;;  %2183 = vmatprep.subr.bf16.mxu1 %v2541_v36  ;;  %v1547_v42 = vld [vmem:[%s3641_s12 + $0x50] sm:$0xff]  ;;  %v1548_v44 = vld [vmem:[%s3641_s12 + $0x58] sm:$0xff] }
 0x69e   :  { %2164 = vmatpush3.bf16.msra.mxu0 %v2163_v9  ;;  %v2187_v9 = vpack.c.bf16 %v1546_v7, %v1545_v5 }
 0x69f   :  { %v1420_v12 = vsel %vm1416_vm3, %v2442_v37, %v2443_v32  ;;  %2165 = vmatprep.subr.bf16.mxu0 %v2541_v36  ;;  %v1421_v34 = vsel %vm1416_vm3, %v2452_v63, %v2453_v0  ;;  %v2190_v32 = vpack.c.bf16 %v1548_v44, %v1547_v42  ;;  %v1549_v37 = vld [vmem:[%s3641_s12 + $0x60] sm:$0xff]  ;;  %v1550_v0 = vld [vmem:[%s3641_s12 + $0x68] sm:$0xff] }
 0x6a0   :  { %v2166_v13 = vpack.c.bf16 %v1420_v12, %v1419_v27  ;;  %v2446_v17 = vpop.permute.xlu0 %2445  ;;  %2185 = vmatpush3.bf16.msra.mxu1 %v2184_v6  ;;  %v2193_v63 = vpack.c.bf16 %v1550_v0, %v1549_v37  ;;  %v1551_v27 = vld [vmem:[%s3641_s12 + $0x70] sm:$0xff]  ;;  %v1552_v12 = vld [vmem:[%s3641_s12 + $0x78] sm:$0xff] }
 0x6a1   :  { %v2447_v15 = vunpack.i.l.bf16 %v2446_v17  ;;  %v2448_v38 = vunpack.i.h.bf16 %v2446_v17  ;;  %2186 = vmatprep.subr.bf16.mxu1 %v2541_v36 }
 0x6a2   :  { %2167 = vmatpush3.bf16.msra.mxu0 %v2166_v13  ;;  %v2196_v13 = vpack.c.bf16 %v1552_v12, %v1551_v27 }
 0x6a3   :  { %v2169_v41 = vpack.c.bf16 %v1421_v34, %v2447_v15  ;;  %v2456_v43 = vpop.permute.xlu1 %2455  ;;  %2168 = vmatprep.subr.bf16.mxu0 %v2541_v36 }
 0x6a4   :  { %v2458_v59 = vunpack.i.h.bf16 %v2456_v43  ;;  %v2457_v18 = vunpack.i.l.bf16 %v2456_v43  ;;  %v1411_v45 = vpop.permute.xlu0 %1410  ;;  %2188 = vmatpush3.bf16.msra.mxu1 %v2187_v9  ;;  %v1709_v43 = vld [vmem:[%s3643_s14] sm:$0xff] }
 0x6a5   :  { %2189 = vmatprep.subr.bf16.mxu1 %v2541_v36 }
 0x6a6   :  { %v1422_v61 = vsel %vm1416_vm3, %v2448_v38, %v2457_v18  ;;  %v1423_v16 = vsel %vm1416_vm3, %v2458_v59, %v1411_v45  ;;  %2170 = vmatpush3.bf16.msra.mxu0 %v2169_v41  ;;  %v1710_v38 = vld [vmem:[%s3643_s14 + $0x8] sm:$0xff]  ;;  %v1711_v18 = vld [vmem:[%s3643_s14 + $0x10] sm:$0xff]  ;;  %v1712_v45 = vld [vmem:[%s3643_s14 + $0x18] sm:$0xff] }
 0x6a7   :  { %v2172_v4 = vpack.c.bf16 %v1423_v16, %v1422_v61  ;;  %2171 = vmatprep.subr.bf16.mxu0 %v2541_v36  ;;  %v1413_v21 = vpop.permute.xlu1 %1412  ;;  %v2199_v59 = vpack.c.bf16 %v1710_v38, %v1709_v43  ;;  %v2202_v61 = vpack.c.bf16 %v1712_v45, %v1711_v18  ;;  %v1713_v16 = vld [vmem:[%s3643_s14 + $0x20] sm:$0xff] }
 0x6a8   :  { %v1415_v11 = vpop.permute.xlu0 %1414  ;;  %2191 = vmatpush3.bf16.msra.mxu1 %v2190_v32  ;;  %v1876_v38 = vld [vmem:[%s3644_s15] ss:$0 sm:$0xff] }
 0x6a9   :  { %v1424_v62 = vsel %vm1416_vm3, %v1413_v21, %v1415_v11  ;;  %2192 = vmatprep.subr.bf16.mxu1 %v2541_v36  ;;  %v1715_v11 = vld [vmem:[%s3643_s14 + $0x30] sm:$0xff] }
 0x6aa   :  { %2173 = vmatpush3.bf16.msra.mxu0 %v2172_v4  ;;  %v1714_v4 = vld [vmem:[%s3643_s14 + $0x28] sm:$0xff] }
 0x6ab   :  { %2007 = vmatprep.subr.mxu0 %v2532_v57  ;;  %v2205_v21 = vpack.c.bf16 %v1714_v4, %v1713_v16 }
 0x6ac   :  { %2194 = vmatpush3.bf16.msra.mxu1 %v2193_v63 }
 0x6ad   :  { %2195 = vmatprep.subr.bf16.mxu1 %v2541_v36 }
 0x6ae   :  { %2008 = vmatpush3.msra.mxu0 %v1424_v62 }
 0x6af   :  { %2010 = vmatmul.mubr.msk.f32.vlgmr.msra.gmra.mrb[2].mxu0 %vm1434_vm4, %v1232_v24  ;;  %2198 = vmatprep.subr.bf16.mxu0 %v2541_v36  ;;  %v1716_v24 = vld [vmem:[%s3643_s14 + $0x38] sm:$0xff] }
 0x6b0   :  { %2079 = vmatprep.mubr.msk.f32.mxu0 %vm2542_vm2, %v2532_v57  ;;  %2197 = vmatpush3.bf16.msra.mxu1 %v2196_v13  ;;  %v2208_v62 = vpack.c.bf16 %v1716_v24, %v1715_v11 }
 0x6b1   :  { %2200 = vmatpush3.bf16.msra.mxu0 %v2199_v59 }
 0x6b2   :  { %2201 = vmatprep.subr.bf16.mxu0 %v2541_v36 }
 0x6b5   :  { %2203 = vmatpush3.bf16.msra.mxu0 %v2202_v61 }
 0x6b6   :  { %2204 = vmatprep.subr.bf16.mxu0 %v2541_v36 }
 0x6b8   :  { %v1378_v29 = vpop.permute.xlu1 %1377 }
 0x6b9   :  { %2206 = vmatpush3.bf16.msra.mxu0 %v2205_v21 }
 0x6ba   :  { %2207 = vmatprep.subr.bf16.mxu0 %v2541_v36 }
 0x6bd   :  { %2209 = vmatpush3.bf16.msra.mxu0 %v2208_v62 }
 0x6be   :  { %2210 = vmatprep.subr.bf16.mxu0 %v2541_v36 }
 0x782   :  { %v1504_v39 = vpop.f32.mrb[2].mxu0 }
 0x783   :  { %v1505_v3 = vadd.f32 %v1504_v39, %v1378_v29  ;;  %v2011_v52 = vpop.f32.mrb[3].mxu0 }
 0x784   :  { %v1717_v52 = vld [vmem:[%s3643_s14 + $0x40] sm:$0xff] }
 0x785   :  { %1510 = vadd.xlane.f32.xlu0 %v1505_v3  ;;  %v1512_v22 = vmul.f32 %v1505_v3, %v1505_v3 }
 0x787   :  { %1513 = vadd.xlane.f32.xlu1 %v1512_v22  ;;  %v1718_v22 = vld [vmem:[%s3643_s14 + $0x48] sm:$0xff] }
 0x812   :  { %v1511_v40 = vpop.xlane.xlu0 %1510 }
 0x813   :  { %v1515_v33 = vmul.f32 0.0078125, %v1511_v40 }
 0x814   :  { %v1514_v8 = vpop.xlane.xlu1 %1513 }
 0x815   :  { %v1517_v10 = vmul.f32 %v1515_v33, %v1515_v33  ;;  %v1516_v47 = vmul.f32 0.0078125, %v1514_v8 }
 0x817   :  { %v1518_v50 = vsub.f32 %v1516_v47, %v1517_v10  ;;  %v1719_v10 = vld [vmem:[%s3643_s14 + $0x50] sm:$0xff]  ;;  %v1720_v47 = vld [vmem:[%s3643_s14 + $0x58] sm:$0xff] }
 0x819   :  { %v1519_v51 = vadd.f32 1e-05, %v1518_v50  ;;  %v2214_v50 = vpack.c.bf16 %v1720_v47, %v1719_v10 }
 0x81b   :  { %2463 = vrsqrt.f32 %v1519_v51 }
 0x825   :  { %v2464_v57 = vpop.eup %2463 }
 0x826   :  { %v1521_v26 = vmul.f32 %v2464_v57, %v1508_v1  ;;  %v1721_v1 = vld [vmem:[%s3643_s14 + $0x60] sm:$0xff]  ;;  %v1722_v57 = vld [vmem:[%s3643_s14 + $0x68] sm:$0xff] }
 0x828   :  { %1524 = vperm.xlu0 %2372, %v1521_v26   ;;  %v1528_v54 = vmul.f32 %v1521_v26, %v1515_v33  ;;  %v2211_v33 = vpack.c.bf16 %v1718_v22, %v1717_v52  ;;  %v2217_v26 = vpack.c.bf16 %v1722_v57, %v1721_v1  ;;  %v1802_v22 = vld [vmem:[%s3645_s16] sm:$0x3] }
 0x82a   :  { %v1529_v23 = vsub.f32 %v1509_v31, %v1528_v54  ;;  %2212 = vmatpush3.bf16.msra.mxu0 %v2211_v33  ;;  %v1723_v54 = vld [vmem:[%s3643_s14 + $0x70] sm:$0xff] }
 0x82b   :  { %2213 = vmatprep.subr.bf16.mxu0 %v2541_v36 }
 0x82c   :  { %1532 = vperm.xlu1 %2373, %v1529_v23   ;;  %v1724_v23 = vld [vmem:[%s3643_s14 + $0x78] sm:$0xff] }
 0x82d   :  { %v2220_v2 = vpack.c.bf16 %v1724_v23, %v1723_v54 }
 0x82e   :  { %2215 = vmatpush3.bf16.msra.mxu0 %v2214_v50 }
 0x82f   :  { %2216 = vmatprep.subr.bf16.mxu0 %v2541_v36 }
 0x832   :  { %2218 = vmatpush3.bf16.msra.mxu0 %v2217_v26 }
 0x833   :  { %2219 = vmatprep.subr.bf16.mxu0 %v2541_v36 }
 0x836   :  { %2221 = vmatpush3.bf16.msra.mxu0 %v2220_v2 }
 0x8a7   :  { %v1525_v20 = vpop.permute.xlu0 %1524 }
 0x8a8   :  { %v1527_v60 = vmul.f32 %v1525_v20, %v1505_v3 }
 0x8ab   :  { %v1533_v58 = vpop.permute.xlu1 %1532 }
 0x8ac   :  { %v1535_v46 = vadd.f32 %v1533_v58, %v1527_v60 }
 0x8ae   :  { %v1536_v49 = vmax.f32 %v1535_v46, 0.0 }
 0x8b0   :  { %1554 = vrot.lane.b32.xlu0 %v1536_v49, %s2520_s3  ;;  %s2546_s3 = smov 80  }
 0x922   :  { %v1555_v17 = vpop.permute.xlu0 %1554 }
 0x923   :  { %v1557_v15 = vmax.f32 %v1536_v49, %v1555_v17  ;;  %v1707_v17 = vld [vmem:[%s3642_s13] sm:$0x3] }
 0x925   :  { %1559 = vrot.lane.b32.xlu1 %v1557_v15, %s2535_s2 }
 0x997   :  { %v1560_v34 = vpop.permute.xlu1 %1559 }
 0x998   :  { %v1562_v41 = vmax.f32 %v1557_v15, %v1560_v34 }
 0x99a   :  { %2045 = vmatmul.mubr.f32.vlgmr.msra.gmra.mrb[6].mxu1 %v1562_v41 }
 0xa6d   :  { %v3538_v29 = vpop.f32.mrb[6].mxu1 }
 0xa6e   :  { %1673 = vrot.lane.b32.xlu0 %v3538_v29, %s2519_s25  ;;  %v2046_v39 = vpop.f32.mrb[7].mxu1  ;;  %v1638_v3 = vrot.slane %v3538_v29, 2  ;;  %v1634_v40 = vrot.slane %v3538_v29, 1  ;;  %v1642_v8 = vrot.slane %v3538_v29, 3  ;;  %v1646_v51 = vrot.slane %v3538_v29, 4 }
 0xa6f   :  { %v1650_v31 = vrot.slane %v3538_v29, 5  ;;  %v1654_v19 = vrot.slane %v3538_v29, 6  ;;  %v1658_v36 = vrot.slane %v3538_v29, 7 }
 0xa70   :  { %1677 = vrot.lane.b32.xlu1 %v1638_v3, %s3665_s11 }
 0xa72   :  { %1635 = vrot.lane.b32.xlu0 %v1634_v40, %s3665_s11 }
 0xa74   :  { %1680 = vrot.lane.b32.xlu1 %v1642_v8, %s2543_s1 }
 0xa76   :  { %1639 = vrot.lane.b32.xlu0 %v1638_v3, %s2543_s1 }
 0xa78   :  { %1683 = vrot.lane.b32.xlu1 %v1646_v51, %s2544_s7 }
 0xa7a   :  { %1643 = vrot.lane.b32.xlu0 %v1642_v8, %s2544_s7 }
 0xa7c   :  { %1686 = vrot.lane.b32.xlu1 %v1650_v31, %s2545_s21 }
 0xa7e   :  { %1647 = vrot.lane.b32.xlu0 %v1646_v51, %s2545_s21 }
 0xa80   :  { %1689 = vrot.lane.b32.xlu1 %v1654_v19, %s2546_s3 }
 0xa82   :  { %1651 = vrot.lane.b32.xlu0 %v1650_v31, %s2546_s3 }
 0xa84   :  { %1692 = vrot.lane.b32.xlu1 %v1658_v36, %s3666_s26 }
 0xa86   :  { %1655 = vrot.lane.b32.xlu0 %v1654_v19, %s3666_s26 }
 0xa88   :  { %1659 = vrot.lane.b32.xlu1 %v1658_v36, %s2519_s25 }
 0xae0   :  { %v1674_v55 = vpop.permute.xlu0 %1673 }
 0xae1   :  { %v1695_v58 = vsel %vm381_vm5, %v1674_v55, %v1634_v40 }
 0xae2   :  { %v1678_v56 = vpop.permute.xlu1 %1677 }
 0xae3   :  { %v1696_v30 = vsel %vm1663_vm6, %v1695_v58, %v1678_v56 }
 0xae4   :  { %v1636_v14 = vpop.permute.xlu0 %1635 }
 0xae5   :  { %v1662_v49 = vsel %vm381_vm5, %v3538_v29, %v1636_v14  ;;  %vm1804_vm5 = vcmask 25600  }
 0xae6   :  { %v1681_v20 = vpop.permute.xlu1 %1680 }
 0xae7   :  { %v1697_v25 = vsel %vm1665_vm7, %v1696_v30, %v1681_v20 }
 0xae8   :  { %v1640_v28 = vpop.permute.xlu0 %1639 }
 0xae9   :  { %v1664_v7 = vsel %vm1663_vm6, %v1662_v49, %v1640_v28 }
 0xaea   :  { %v1684_v48 = vpop.permute.xlu1 %1683 }
 0xaeb   :  { %v1698_v6 = vsel %vm1667_vm8, %v1697_v25, %v1684_v48 }
 0xaec   :  { %v1644_v35 = vpop.permute.xlu0 %1643 }
 0xaed   :  { %v1666_v42 = vsel %vm1665_vm7, %v1664_v7, %v1644_v35 }
 0xaee   :  { %v1687_v60 = vpop.permute.xlu1 %1686 }
 0xaef   :  { %v1699_v9 = vsel %vm1669_vm9, %v1698_v6, %v1687_v60 }
 0xaf0   :  { %v1648_v46 = vpop.permute.xlu0 %1647 }
 0xaf1   :  { %v1668_v37 = vsel %vm1667_vm8, %v1666_v42, %v1648_v46 }
 0xaf2   :  { %v1690_v53 = vpop.permute.xlu1 %1689 }
 0xaf3   :  { %v1700_v44 = vsel %vm585_vm12, %v1699_v9, %v1690_v53 }
 0xaf4   :  { %v1652_v5 = vpop.permute.xlu0 %1651 }
 0xaf5   :  { %v1670_v63 = vsel %vm1669_vm9, %v1668_v37, %v1652_v5 }
 0xaf6   :  { %v1693_v32 = vpop.permute.xlu1 %1692 }
 0xaf7   :  { %v1701_v0 = vsel %vm151_vm1, %v1700_v44, %v1693_v32 }
 0xaf8   :  { %v1656_v27 = vpop.permute.xlu0 %1655  ;;  %v1703_v13 = vrot.slane %v1701_v0, 7 }
 0xaf9   :  { %v1671_v12 = vsel %vm585_vm12, %v1670_v63, %v1656_v27 }
 0xafa   :  { %v1660_v15 = vpop.permute.xlu1 %1659 }
 0xafb   :  { %v1672_v34 = vsel %vm151_vm1, %v1671_v12, %v1660_v15 }
 0xafc   :  { %v1706_v41 = vsel %vm1705_vm10, %v1672_v34, %v1703_v13 }
 0xafd   :  { %v1708_v43 = vmul.f32 %v1707_v17, %v1706_v41 }
 0xaff   :  { %2080 = vmatmul.mubr.f32.vlgmr.msra.gmra.mrb[4].mxu0 %v1708_v43 }
 0xbd2   :  { %v1798_v59 = vpop.f32.mrb[4].mxu0 }
 0xbd3   :  { %v1799_v18 = vadd.f32 %v1876_v38, %v1798_v59  ;;  %v2081_v45 = vpop.f32.mrb[5].mxu0 }
 0xbd5   :  { %v1805_v61 = vsel %vm1804_vm5, %v1799_v18, -inf }
 0xbd6   :  { %1806 = vmax.xlane.f32.xlu0 %v1805_v61 }
 0xc63   :  { %v1807_v16 = vpop.xlane.xlu0 %1806 }
 0xc64   :  { %v1808_v4 = vsub.f32 %v1799_v18, %v1807_v16 }
 0xc66   :  { %v1809_v21 = vmul.f32 1.442695, %v1808_v4 }
 0xc68   :  { %2465 = vpow2.f32 %v1809_v21 }
 0xc72   :  { %v2466_v11 = vpop.eup %2465 }
 0xc73   :  { %v1811_v24 = vsel %vm1804_vm5, %v2466_v11, 0.0 }
 0xc74   :  { %1812 = vadd.xlane.f32.xlu1 %v1811_v24 }
 0xd01   :  { %v1813_v62 = vpop.xlane.xlu1 %1812 }
 0xd02   :  { %2467 = vrcp.f32 %v1813_v62 }
 0xd03   :  { %2469 = vlog2.f32 %v1813_v62 }
 0xd0c   :  { %v2468_v29 = vpop.eup %2467 }
 0xd0d   :  { %v2470_v39 = vpop.eup %2469  ;;  %v1815_v3 = vmul.f32 %v2468_v29, %v2466_v11 }
 0xd0e   :  { %v1817_v52 = vmul.f32 0.6931472, %v2470_v39 }
 0xd0f   :  { %1833 = vst.msk [vmem:[#allocation2] sm:$0x3] %vm1804_vm5, %v1815_v3 }
 0xd10   :  { %v1818_v40 = vsub.f32 %v1808_v4, %v1817_v52 }
 0xd12   :  { %v1819_v33 = vmul.f32 %v1818_v40, %v1802_v22 }
 0xd14   :  { %v1820_v8 = vsel %vm1804_vm5, %v1819_v33, 0.0 }
 0xd15   :  { %1821 = vadd.xlane.f32.xlu0 %v1820_v8 }
 0xd16   :  { %2482 = shalt.err (!%p2479_p4)
}
 0xd17   :  { %s2483_s16 = scalar_lea.hbm %s3647_s18, 32 }
 0xd18   :  { %p2484_p5 = scmp.ne.s32.totalorder %s3647_s18, %s2483_s16  ;;  %p2487_p6 = scmp.lt.u32.totalorder %s2483_s16, %s3647_s18 }
 0xd1a   :  { %p2489_p7 = pnand %p2487_p6, %p2484_p5 }
 0xd1c   :  { %2492 = shalt.err (!%p2489_p7)
}
 0xd1d   :  { %1845 = dma.vmem_to_hbm [thread:$0]  %s1843_s28, 32, %s3647_s18, [#allocation3]   ;;  %v1803_v10 = vld [vmem:[%s3646_s17] sm:$0x3]  ;;  %vm1824_vm1 = vcmask 1024   ;;  %vm1834_vm11 = vcmask 0  }
 0xd1e   :  { %s2548_s7 = smov [#allocation4]  }
 0xd1f   :  { %s1852_s20 = sshll.u32 %s2548_s7, 4  ;;  %s1853_s20 = int_to_ptr.vmem [resolvable:$true] %s1852_s20 }
 0xd20   :  { %s2493_s18 = scalar_lea.vmem %s1853_s20, 16  ;;  %s2497_s4 = scalar_lea.vmem %s1853_s20, 32 }
 0xd21   :  { %p2494_p8 = scmp.ne.s32.totalorder %s1853_s20, %s2493_s18  ;;  %p2498_p9 = scmp.lt.s32.totalorder %s1853_s20, %s1853_s20 }
 0xd22   :  { %p2499_p10 = scmp.lt.s32.totalorder %s2497_s4, %s2493_s18 }
 0xd24   :  { %p2500_p11 = por %p2499_p10, %p2498_p9 }
 0xd26   :  { %p2501_p12 = pnand %p2500_p11, %p2494_p8 }
 0xda2   :  { %v1822_v47 = vpop.xlane.xlu0 %1821 }
 0xda3   :  { %v1823_v50 = vmul.f32 %v1822_v47, %v1803_v10 }
 0xda5   :  { %v1825_v51 = vsel %vm1824_vm1, %v1823_v50, 0.0 }
 0xda6   :  { %v1826_v1 = vrot.slane %v1825_v51, 4 }
 0xda8   :  { %v1827_v57 = vadd.f32 %v1826_v1, %v1825_v51 }
 0xdaa   :  { %v1828_v26 = vrot.slane %v1827_v57, 2 }
 0xdac   :  { %v1829_v31 = vadd.f32 %v1828_v26, %v1827_v57 }
 0xdae   :  { %v1830_v54 = vrot.slane %v1829_v31, 1 }
 0xdb0   :  { %v1831_v23 = vadd.f32 %v1830_v54, %v1829_v31 }
 0xdb2   :  { %v1832_v2 = vsub.f32 0.0, %v1831_v23 }
 0xdb4   :  { %1835 = vst.msk [vmem:[#allocation4] sm:$0x1] %vm1834_vm11, %v1832_v2 }
 0xdb5   :  { %2504 = shalt.err (!%p2501_p12)
}
 0xdb6   :  { %s2505_s5 = scalar_lea.hbm %s3648_s19, 16 }
 0xdb7   :  { %p2506_p13 = scmp.ne.s32.totalorder %s3648_s19, %s2505_s5  ;;  %p2509_p0 = scmp.lt.u32.totalorder %s2505_s5, %s3648_s19 }
 0xdb9   :  { %p2511_p1 = pnand %p2509_p0, %p2506_p13 }
 0xdbb   :  { %2514 = shalt.err (!%p2511_p1)
}
 0xdbc   :  { %1855 = dma.vmem_to_hbm [thread:$0]  %s1853_s20, 16, %s3648_s19, [#allocation5]  }
 0xdbd   :  { %2515 = dma.done.wait [#allocation3], 32  }
 0xdbe   :  { %2516 = vsyncadd [#allocation3], 4294967264 }
 0xdbf   :  { %2517 = dma.done.wait [#allocation5], 16  }
 0xdc0   :  { %2518 = vsyncadd [#allocation5], 4294967280 }
 0xdc1   :  { %1862 = vsyncpa [#allocation3], 1 }
 0xdc2   :  { %1863 = vsyncpa [#allocation5], 1 }

</bundles_post_ra>
